<compile_context>
chip_gen: v6e
topology: v6e:2x2x1
jax: 0.10.0
libtpu: 0.0.40
codegen_flags: <defaults>
</compile_context>

<pallas_src>
import functools

import jax
import jax.numpy as jnp
from jax.experimental import pallas as pl
from jax.experimental.pallas import tpu as pltpu

LAYER_SIZES = [1 * 28 * 28, 512, 265, 128, 10]


def _round_up(x: int, m: int) -> int:
    return (x + m - 1) // m * m


# ----------------------------------------------------------------------------
# Pallas kernel: fused 4-layer MLP (matmul + bias + ReLU, x4)
# Activations/weights are bf16 into the MXU, accumulation in f32.
# ----------------------------------------------------------------------------
def _mlp_kernel(x_ref, w1_ref, b1_ref, w2_ref, b2_ref,
                w3_ref, b3_ref, w4_ref, b4_ref, o_ref):
    # x arrives as f32 (no wrapper-side HBM convert pass); cast to bf16 here,
    # hidden under MXU cycles.
    h = x_ref[...].astype(jnp.bfloat16)                                  # (tb, 784)
    h = jnp.dot(h, w1_ref[...], preferred_element_type=jnp.float32) + b1_ref[...]
    h = jnp.maximum(h, 0.0).astype(jnp.bfloat16)
    h = jnp.dot(h, w2_ref[...], preferred_element_type=jnp.float32) + b2_ref[...]
    h = jnp.maximum(h, 0.0).astype(jnp.bfloat16)
    h = jnp.dot(h, w3_ref[...], preferred_element_type=jnp.float32) + b3_ref[...]
    h = jnp.maximum(h, 0.0).astype(jnp.bfloat16)
    h = jnp.dot(h, w4_ref[...], preferred_element_type=jnp.float32) + b4_ref[...]
    # fc4 was built with output=False -> ReLU is applied here too (matches torch code).
    h = jnp.maximum(h, 0.0)
    o_ref[...] = h.astype(o_ref.dtype)                                   # bf16 writeback


# ----------------------------------------------------------------------------
# Parameter construction (deterministic, mimics nn.Linear default init)
# ----------------------------------------------------------------------------
def model_dims(splits):
    """Feature dims [d0, d1, d2, d3, d4] implied by the splits config."""
    dims = [LAYER_SIZES[0]]
    for i, sp in enumerate(splits):
        n = len(sp)
        seg = LAYER_SIZES[i + 1] // n
        dims.append(seg * n)
    return dims


def init_params(splits, key):
    """Master (f32) params. W: (d_in, d_out), b: (1, d_out).
    Segment concat == one big Linear."""
    dims = model_dims(splits)
    params = []
    for i in range(4):
        fan_in = dims[i]
        k = 1.0 / (fan_in ** 0.5)
        key, kw, kb = jax.random.split(key, 3)
        w = jax.random.uniform(kw, (dims[i], dims[i + 1]), jnp.float32, -k, k)
        b = jax.random.uniform(kb, (1, dims[i + 1]), jnp.float32, -k, k)
        params.append((w, b))
    return params, dims


def prepare_params(params):
    """One-time prep for the kernel: pad odd feature dims to lane multiples
    (265 -> 384, 10 -> 128) and cast weights to bf16 (biases stay f32).
    Done OUTSIDE the jitted forward so no per-call padding traffic is paid.
    Zero rows/cols in the padding are mathematically inert."""
    dims = [params[0][0].shape[0]] + [w.shape[1] for (w, _) in params]
    pdims = [dims[0]] + [_round_up(d, 128) for d in dims[1:]]   # 784 K-dim stays unpadded
    prepared = []
    for i, (w, b) in enumerate(params):
        din, dout = dims[i], dims[i + 1]
        pin, pout = pdims[i], pdims[i + 1]
        wp = jnp.zeros((pin, pout), jnp.bfloat16).at[:din, :dout].set(
            w.astype(jnp.bfloat16))
        bp = jnp.zeros((1, pout), jnp.float32).at[:, :dout].set(b)
        prepared.extend([wp, bp])
    return tuple(prepared)


# ----------------------------------------------------------------------------
# Batch-tile heuristic (device-generation aware)
# ----------------------------------------------------------------------------
def _multi_tensorcore_chip() -> bool:
    """True on chips with 2 TensorCores (v4 / v5p / v7x); False on v5e/v6e."""
    try:
        kind = jax.devices()[0].device_kind.lower()
    except Exception:
        return False
    return ("v4" in kind) or ("v5p" in kind) or ("7" in kind)


def _auto_tb(batch: int) -> int:
    bp8 = _round_up(max(int(batch), 1), 8)
    if _multi_tensorcore_chip() and batch >= 512:
        # 2 TCs per chip: give the 1-D "parallel" grid >= 2 steps so megacore
        # can shard it -- but only at batch sizes where per-core activation
        # traffic outweighs the per-TC duplicated weight fetch.
        tb = min(512, _round_up(pl.cdiv(bp8, 2), 8))
    else:
        # Single-TC chips (v5e/v6e) or small batch: one big tile minimises
        # per-grid-step overhead (~0.35 us/step) on a kernel only a few us long.
        tb = min(512, bp8)
    return int(tb)


# ----------------------------------------------------------------------------
# Forward wrapper
# ----------------------------------------------------------------------------
@functools.partial(jax.jit, static_argnames=("tb", "out_dim"))
def _forward_jit(x, prepared, *, tb, out_dim):
    w1, b1, w2, b2, w3, b3, w4, b4 = prepared
    B = x.shape[0]
    xf = x.reshape(B, -1)                 # == torch view(-1, 784); stays f32 (free reshape)
    d_in = xf.shape[1]

    # Pad batch only to the 8-row sublane granule (cheap, ragged path only).
    Bp8 = _round_up(B, 8)
    if Bp8 != B:
        xf = jnp.pad(xf, ((0, Bp8 - B), (0, 0)))

    grid = pl.cdiv(Bp8, tb)
    Bp = grid * tb                        # rows the kernel writes (>= Bp8); sliced below
    d_out_p = w4.shape[1]

    def const_spec(shape):                # weights/biases: constant block index
        return pl.BlockSpec(shape, lambda i: (0, 0))

    in_specs = [
        pl.BlockSpec((tb, d_in), lambda i: (i, 0)),      # activations, tiled over batch
        const_spec(w1.shape), const_spec(b1.shape),
        const_spec(w2.shape), const_spec(b2.shape),
        const_spec(w3.shape), const_spec(b3.shape),
        const_spec(w4.shape), const_spec(b4.shape),
    ]

    # Advisory cost estimate so XLA schedules neighbouring ops sensibly.
    flops = 2 * B * (w1.shape[0] * w1.shape[1] + w2.shape[0] * w2.shape[1]
                     + w3.shape[0] * w3.shape[1] + w4.shape[0] * w4.shape[1])
    weight_bytes = sum(int(a.size) * a.dtype.itemsize
                       for a in (w1, b1, w2, b2, w3, b3, w4, b4))
    bytes_accessed = weight_bytes + Bp8 * d_in * 4 + Bp * d_out_p * 2

    out = pl.pallas_call(
        _mlp_kernel,
        out_shape=jax.ShapeDtypeStruct((Bp, d_out_p), jnp.bfloat16),
        grid_spec=pltpu.PrefetchScalarGridSpec(
            num_scalar_prefetch=0,
            grid=(grid,),
            in_specs=in_specs,
            out_specs=pl.BlockSpec((tb, d_out_p), lambda i: (i, 0)),
        ),
        compiler_params=pltpu.CompilerParams(
            dimension_semantics=("parallel",),
            vmem_limit_bytes=32 * 1024 * 1024,
        ),
        cost_estimate=pl.CostEstimate(flops=flops, transcendentals=0,
                                      bytes_accessed=bytes_accessed),
    )(xf, w1, b1, w2, b2, w3, b3, w4, b4)

    # Strip batch / lane padding; tiny (B, 10) slice, cast back to f32 outside.
    return out[:B, :out_dim].astype(jnp.float32)


def fedplt_dense_forward(x, prepared, out_dim, tb=None):
    """Runs the fused MLP with a device-aware batch-tile choice."""
    if tb is None:
        tb = _auto_tb(x.shape[0])
    return _forward_jit(x, tuple(prepared), tb=int(tb), out_dim=int(out_dim))


# ----------------------------------------------------------------------------
# Plain-JAX reference (bf16 matmul operands, f32 accumulation -- mirrors kernel)
# ----------------------------------------------------------------------------
def reference_forward(x, params):
    h = x.reshape(x.shape[0], -1).astype(jnp.float32)
    for (w, b) in params:
        z = jnp.dot(h.astype(jnp.bfloat16), w.astype(jnp.bfloat16),
                    preferred_element_type=jnp.float32) + b
        h = jnp.maximum(z, 0.0)
    return h


if __name__ == "__main__":
    # splits config: fc1 -> 2 segments, fc2 -> 5, fc3 -> 2, fc4 -> 2
    # => layer widths 784 -> 512 -> 265 -> 128 -> 10
    splits = [[0, 0], [0, 0, 0, 0, 0], [0, 0], [0, 0]]

    key = jax.random.PRNGKey(0)
    kx, kp = jax.random.split(key)
    params, dims = init_params(splits, kp)
    prepared = prepare_params(params)            # pad + bf16-cast once, outside jit

    # Small main case (single tile, single grid step).
    B = 32
    x = jax.random.normal(kx, (B, 1, 28, 28), jnp.float32)   # NCHW, like torch
    y = jax.block_until_ready(fedplt_dense_forward(x, prepared, out_dim=dims[-1]))
    y_ref = reference_forward(x, params)
    assert y.shape == (B, dims[-1]), (y.shape, dims)
    assert jnp.allclose(y, y_ref, atol=2e-2, rtol=2e-2), "mismatch vs reference (B=32)"

    # Ragged small batch exercises the sublane-only padding path.
    B2 = 6
    x2 = jax.random.normal(jax.random.PRNGKey(1), (B2, 1, 28, 28), jnp.float32)
    y2 = jax.block_until_ready(fedplt_dense_forward(x2, prepared, out_dim=dims[-1]))
    y2_ref = reference_forward(x2, params)
    assert y2.shape == (B2, dims[-1])
    assert jnp.allclose(y2, y2_ref, atol=2e-2, rtol=2e-2), "mismatch vs reference (B=6)"

    print("KERNEL_OK")
</pallas_src>

<mosaic_0001>
module attributes {stable_mosaic.version = 11 : i64} {
  func.func @_mlp_kernel(%arg0: i32, %arg1: memref<32x784xf32, #tpu.memory_space<vmem>>, %arg2: memref<784x512xbf16, #tpu.memory_space<vmem>>, %arg3: memref<1x512xf32, #tpu.memory_space<vmem>>, %arg4: memref<512x384xbf16, #tpu.memory_space<vmem>>, %arg5: memref<1x384xf32, #tpu.memory_space<vmem>>, %arg6: memref<384x128xbf16, #tpu.memory_space<vmem>>, %arg7: memref<1x128xf32, #tpu.memory_space<vmem>>, %arg8: memref<128x128xbf16, #tpu.memory_space<vmem>>, %arg9: memref<1x128xf32, #tpu.memory_space<vmem>>, %arg10: memref<32x128xbf16, #tpu.memory_space<vmem>>) attributes {dimension_semantics = [#tpu.dimension_semantics<parallel>], iteration_bounds = array<i64: 1>, scalar_prefetch = 0 : i64, scratch_operands = 0 : i64, tpu.core_type = #tpu.core_type<tc>, window_params = [{transform_indices = @transform_0, window_bounds = array<i64: 32, 784>}, {pipeline_mode = #tpu.pipeline_mode<synchronous>, transform_indices = @transform_1, window_bounds = array<i64: 784, 512>}, {pipeline_mode = #tpu.pipeline_mode<synchronous>, transform_indices = @transform_2, window_bounds = array<i64: 1, 512>}, {pipeline_mode = #tpu.pipeline_mode<synchronous>, transform_indices = @transform_3, window_bounds = array<i64: 512, 384>}, {pipeline_mode = #tpu.pipeline_mode<synchronous>, transform_indices = @transform_4, window_bounds = array<i64: 1, 384>}, {pipeline_mode = #tpu.pipeline_mode<synchronous>, transform_indices = @transform_5, window_bounds = array<i64: 384, 128>}, {pipeline_mode = #tpu.pipeline_mode<synchronous>, transform_indices = @transform_6, window_bounds = array<i64: 1, 128>}, {pipeline_mode = #tpu.pipeline_mode<synchronous>, transform_indices = @transform_7, window_bounds = array<i64: 128, 128>}, {pipeline_mode = #tpu.pipeline_mode<synchronous>, transform_indices = @transform_8, window_bounds = array<i64: 1, 128>}, {transform_indices = @transform_9, window_bounds = array<i64: 32, 128>}]} {
    %c0 = arith.constant 0 : index
    %c0_0 = arith.constant 0 : index
    %0 = vector.load %arg1[%c0, %c0_0] : memref<32x784xf32, #tpu.memory_space<vmem>>, vector<32x784xf32>
    %1 = arith.truncf %0 : vector<32x784xf32> to vector<32x784xbf16>
    %c0_1 = arith.constant 0 : index
    %c0_2 = arith.constant 0 : index
    %2 = vector.load %arg2[%c0_1, %c0_2] : memref<784x512xbf16, #tpu.memory_space<vmem>>, vector<784x512xbf16>
    %cst = arith.constant dense<0.000000e+00> : vector<32x512xf32>
    %3 = tpu.matmul %1, %2, %cst {dimension_numbers = #tpu.dot_dimension_numbers<[1], [0], [0], [1], [0, 0, 1, 1], [], []>} : vector<32x784xbf16>, vector<784x512xbf16>, vector<32x512xf32> -> vector<32x512xf32>
    %c0_3 = arith.constant 0 : index
    %c0_4 = arith.constant 0 : index
    %4 = vector.load %arg3[%c0_3, %c0_4] : memref<1x512xf32, #tpu.memory_space<vmem>>, vector<1x512xf32>
    %5 = vector.broadcast %4 : vector<1x512xf32> to vector<32x512xf32>
    %6 = arith.addf %3, %5 : vector<32x512xf32>
    %cst_5 = arith.constant 0.000000e+00 : f32
    %7 = vector.broadcast %cst_5 : f32 to vector<32x512xf32>
    %8 = arith.maximumf %6, %7 : vector<32x512xf32>
    %9 = arith.truncf %8 : vector<32x512xf32> to vector<32x512xbf16>
    %c0_6 = arith.constant 0 : index
    %c0_7 = arith.constant 0 : index
    %10 = vector.load %arg4[%c0_6, %c0_7] : memref<512x384xbf16, #tpu.memory_space<vmem>>, vector<512x384xbf16>
    %cst_8 = arith.constant dense<0.000000e+00> : vector<32x384xf32>
    %11 = tpu.matmul %9, %10, %cst_8 {dimension_numbers = #tpu.dot_dimension_numbers<[1], [0], [0], [1], [0, 0, 1, 1], [], []>} : vector<32x512xbf16>, vector<512x384xbf16>, vector<32x384xf32> -> vector<32x384xf32>
    %c0_9 = arith.constant 0 : index
    %c0_10 = arith.constant 0 : index
    %12 = vector.load %arg5[%c0_9, %c0_10] : memref<1x384xf32, #tpu.memory_space<vmem>>, vector<1x384xf32>
    %13 = vector.broadcast %12 : vector<1x384xf32> to vector<32x384xf32>
    %14 = arith.addf %11, %13 : vector<32x384xf32>
    %cst_11 = arith.constant 0.000000e+00 : f32
    %15 = vector.broadcast %cst_11 : f32 to vector<32x384xf32>
    %16 = arith.maximumf %14, %15 : vector<32x384xf32>
    %17 = arith.truncf %16 : vector<32x384xf32> to vector<32x384xbf16>
    %c0_12 = arith.constant 0 : index
    %c0_13 = arith.constant 0 : index
    %18 = vector.load %arg6[%c0_12, %c0_13] : memref<384x128xbf16, #tpu.memory_space<vmem>>, vector<384x128xbf16>
    %cst_14 = arith.constant dense<0.000000e+00> : vector<32x128xf32>
    %19 = tpu.matmul %17, %18, %cst_14 {dimension_numbers = #tpu.dot_dimension_numbers<[1], [0], [0], [1], [0, 0, 1, 1], [], []>} : vector<32x384xbf16>, vector<384x128xbf16>, vector<32x128xf32> -> vector<32x128xf32>
    %c0_15 = arith.constant 0 : index
    %c0_16 = arith.constant 0 : index
    %20 = vector.load %arg7[%c0_15, %c0_16] : memref<1x128xf32, #tpu.memory_space<vmem>>, vector<1x128xf32>
    %21 = vector.broadcast %20 : vector<1x128xf32> to vector<32x128xf32>
    %22 = arith.addf %19, %21 : vector<32x128xf32>
    %cst_17 = arith.constant 0.000000e+00 : f32
    %23 = vector.broadcast %cst_17 : f32 to vector<32x128xf32>
    %24 = arith.maximumf %22, %23 : vector<32x128xf32>
    %25 = arith.truncf %24 : vector<32x128xf32> to vector<32x128xbf16>
    %c0_18 = arith.constant 0 : index
    %c0_19 = arith.constant 0 : index
    %26 = vector.load %arg8[%c0_18, %c0_19] : memref<128x128xbf16, #tpu.memory_space<vmem>>, vector<128x128xbf16>
    %cst_20 = arith.constant dense<0.000000e+00> : vector<32x128xf32>
    %27 = tpu.matmul %25, %26, %cst_20 {dimension_numbers = #tpu.dot_dimension_numbers<[1], [0], [0], [1], [0, 0, 1, 1], [], []>} : vector<32x128xbf16>, vector<128x128xbf16>, vector<32x128xf32> -> vector<32x128xf32>
    %c0_21 = arith.constant 0 : index
    %c0_22 = arith.constant 0 : index
    %28 = vector.load %arg9[%c0_21, %c0_22] : memref<1x128xf32, #tpu.memory_space<vmem>>, vector<1x128xf32>
    %29 = vector.broadcast %28 : vector<1x128xf32> to vector<32x128xf32>
    %30 = arith.addf %27, %29 : vector<32x128xf32>
    %cst_23 = arith.constant 0.000000e+00 : f32
    %31 = vector.broadcast %cst_23 : f32 to vector<32x128xf32>
    %32 = arith.maximumf %30, %31 : vector<32x128xf32>
    %33 = arith.truncf %32 : vector<32x128xf32> to vector<32x128xbf16>
    %c0_24 = arith.constant 0 : index
    %c0_25 = arith.constant 0 : index
    %34 = vector.load %arg10[%c0_24, %c0_25] : memref<32x128xbf16, #tpu.memory_space<vmem>>, vector<32x128xbf16>
    tpu.vector_store %arg10[%c0_24, %c0_25], %33 {strides = array<i32>} : memref<32x128xbf16, #tpu.memory_space<vmem>>, vector<32x128xbf16>,
    return
  }
  func.func @transform_0(%arg0: i32) -> (i32, i32) {
    %c0_i32 = arith.constant 0 : i32
    %c0_i32_0 = arith.constant 0 : i32
    return %arg0, %c0_i32 : i32, i32
  }
  func.func @transform_1(%arg0: i32) -> (i32, i32) {
    %c0_i32 = arith.constant 0 : i32
    %c0_i32_0 = arith.constant 0 : i32
    %c0_i32_1 = arith.constant 0 : i32
    return %c0_i32, %c0_i32_0 : i32, i32
  }
  func.func @transform_2(%arg0: i32) -> (i32, i32) {
    %c0_i32 = arith.constant 0 : i32
    %c0_i32_0 = arith.constant 0 : i32
    %c0_i32_1 = arith.constant 0 : i32
    return %c0_i32, %c0_i32_0 : i32, i32
  }
  func.func @transform_3(%arg0: i32) -> (i32, i32) {
    %c0_i32 = arith.constant 0 : i32
    %c0_i32_0 = arith.constant 0 : i32
    %c0_i32_1 = arith.constant 0 : i32
    return %c0_i32, %c0_i32_0 : i32, i32
  }
  func.func @transform_4(%arg0: i32) -> (i32, i32) {
    %c0_i32 = arith.constant 0 : i32
    %c0_i32_0 = arith.constant 0 : i32
    %c0_i32_1 = arith.constant 0 : i32
    return %c0_i32, %c0_i32_0 : i32, i32
  }
  func.func @transform_5(%arg0: i32) -> (i32, i32) {
    %c0_i32 = arith.constant 0 : i32
    %c0_i32_0 = arith.constant 0 : i32
    %c0_i32_1 = arith.constant 0 : i32
    return %c0_i32, %c0_i32_0 : i32, i32
  }
  func.func @transform_6(%arg0: i32) -> (i32, i32) {
    %c0_i32 = arith.constant 0 : i32
    %c0_i32_0 = arith.constant 0 : i32
    %c0_i32_1 = arith.constant 0 : i32
    return %c0_i32, %c0_i32_0 : i32, i32
  }
  func.func @transform_7(%arg0: i32) -> (i32, i32) {
    %c0_i32 = arith.constant 0 : i32
    %c0_i32_0 = arith.constant 0 : i32
    %c0_i32_1 = arith.constant 0 : i32
    return %c0_i32, %c0_i32_0 : i32, i32
  }
  func.func @transform_8(%arg0: i32) -> (i32, i32) {
    %c0_i32 = arith.constant 0 : i32
    %c0_i32_0 = arith.constant 0 : i32
    %c0_i32_1 = arith.constant 0 : i32
    return %c0_i32, %c0_i32_0 : i32, i32
  }
  func.func @transform_9(%arg0: i32) -> (i32, i32) {
    %c0_i32 = arith.constant 0 : i32
    %c0_i32_0 = arith.constant 0 : i32
    return %arg0, %c0_i32 : i32, i32
  }
}

</mosaic_0001>

<bundles_post_ra>
// kernel: _forward_jit.1
= control target key start
LH: loop header
LB: loop body
LE: loop exit
PB: predicated region body
PF: predicated region fallthrough
CT: control target
= control target key end

     0   :  { %14 = vsyncpa [#allocation3], 0  ;;  %s4703_s0 = inlined_call_operand.vmem [shape: f32[32,784], index: 0, kind: input, shape index: {}]   ;;  %s4704_s1 = inlined_call_operand.hbm [shape: bf16[784,512], index: 1, kind: input, shape index: {}]   ;;  %s4705_s2 = inlined_call_operand.vmem [shape: f32[1,512], index: 2, kind: input, shape index: {}]   ;;  %s4706_s3 = inlined_call_operand.vmem [shape: bf16[512,384], index: 3, kind: input, shape index: {}]   ;;  %s4707_s4 = inlined_call_operand.vmem [shape: f32[1,384], index: 4, kind: input, shape index: {}]   ;;  %s4708_s5 = inlined_call_operand.vmem [shape: bf16[384,128], index: 5, kind: input, shape index: {}]   ;;  %s4709_s6 = inlined_call_operand.vmem [shape: f32[1,128], index: 6, kind: input, shape index: {}]   ;;  %s4710_s7 = inlined_call_operand.hbm [shape: bf16[128,128], index: 7, kind: input, shape index: {}]   ;;  %s4711_s8 = inlined_call_operand.vmem [shape: f32[1,128], index: 8, kind: input, shape index: {}]   ;;  %s4712_s9 = inlined_call_operand.vmem [shape: bf16[32,128], index: 9, kind: output, shape index: {}]  }
   0x1   :  { %15 = vsyncpa [#allocation5], 0  ;;  %s4086_s30 = smov [#allocation2]  }
   0x2   :  { %s23_s10 = sshll.u32 %s4086_s30, 4  ;;  %s24_s10 = int_to_ptr.vmem [resolvable:$true] %s23_s10 }
   0x3   :  { %s4050_s11 = scalar_lea.vmem %s24_s10, 25088  ;;  %p4055_p1 = scmp.lt.s32.totalorder %s24_s10, %s24_s10 }
   0x4   :  { %p4051_p0 = scmp.ne.s32.totalorder %s24_s10, %s4050_s11  ;;  %p4056_p2 = scmp.lt.s32.totalorder %s4050_s11, %s4050_s11 }
   0x6   :  { %p4057_p3 = por %p4056_p2, %p4055_p1 }
   0x8   :  { %p4058_p4 = pnand %p4057_p3, %p4051_p0 }
   0xa   :  { %4061 = shalt.err (!%p4058_p4)
}
   0xb   :  { %s4087_s12 = smov 256   ;;  %s4088_s13 = smov 16  }
   0xc   :  { %29 = dma.hbm_to_vmem [thread:$0]  %s4704_s1, 25088, %s24_s10, [#allocation3], %s4087_s12, %s4087_s12, %s4088_s13  }
   0xd   :  { %s4089_s16 = smov [#allocation4]  }
   0xe   :  { %s45_s17 = sshll.u32 %s4089_s16, 4  ;;  %s46_s17 = int_to_ptr.vmem [resolvable:$true] %s45_s17 }
   0xf   :  { %s4070_s18 = scalar_lea.vmem %s46_s17, 1024  ;;  %p4075_p6 = scmp.lt.s32.totalorder %s46_s17, %s46_s17 }
  0x10   :  { %p4071_p5 = scmp.ne.s32.totalorder %s46_s17, %s4070_s18  ;;  %p4076_p7 = scmp.lt.s32.totalorder %s4070_s18, %s4070_s18 }
  0x12   :  { %p4077_p8 = por %p4076_p7, %p4075_p6 }
  0x14   :  { %p4078_p9 = pnand %p4077_p8, %p4071_p5 }
  0x16   :  { %4081 = shalt.err (!%p4078_p9)
}
  0x17   :  { %s4090_s19 = smov 64   ;;  %s4091_s20 = smov 4  }
  0x18   :  { %51 = dma.hbm_to_vmem [thread:$0]  %s4710_s7, 1024, %s46_s17, [#allocation5], %s4090_s19, %s4090_s19, %s4091_s20  }
  0x19   :  { %4082 = dma.done.wait [#allocation3], 25088  }
  0x1a   :  { %4083 = vsyncadd [#allocation3], 4294942208 }
  0x1b   :  { %4084 = dma.done.wait [#allocation5], 1024  }
  0x1c   :  { %4085 = vsyncadd [#allocation5], 4294966272  ;;  %v3588_v0 = vld [vmem:[#allocation2 + $0xe4] ss:$16 sps:$4 sm:$0xff]   ;;  %v3592_v2 = vld [vmem:[#allocation2 + $0xe0] ss:$16 sps:$4 sm:$0xff]  }
  0x1d   :  { %v3590_v1 = vld [vmem:[#allocation2 + $0x2e4] ss:$16 sps:$4 sm:$0xff]   ;;  %1308 = vmatprep.subr.bf16.mxu0 %v3588_v0  ;;  %v3593_v3 = vld [vmem:[#allocation2 + $0x2e0] ss:$16 sps:$4 sm:$0xff]   ;;  %v62_v46 = vld [vmem:[%s4703_s0 + $0x8] sm:$0xff]  ;;  %vm1301_vm0 = vcmask 130048  }
  0x1e   :  { %1361 = vmatprep.subr.bf16.mxu1 %v3590_v1  ;;  %v3594_v4 = vld [vmem:[#allocation2 + $0xc4] ss:$16 sps:$4 sm:$0xff]   ;;  %1309 = vmatpush1.bf16.msra.mxu0 %v3592_v2  ;;  %v3598_v6 = vld [vmem:[#allocation2 + $0xc0] ss:$16 sps:$4 sm:$0xff]   ;;  %v64_v48 = vld [vmem:[%s4703_s0 + $0x18] sm:$0xff] }
  0x1f   :  { %1362 = vmatpush1.bf16.msra.mxu1 %v3593_v3  ;;  %v3596_v5 = vld [vmem:[#allocation2 + $0x2c4] ss:$16 sps:$4 sm:$0xff]   ;;  %1310 = vmatprep.subr.bf16.mxu0 %v3594_v4  ;;  %v3599_v7 = vld [vmem:[#allocation2 + $0x2c0] ss:$16 sps:$4 sm:$0xff]  }
  0x20   :  { %1363 = vmatprep.subr.bf16.mxu1 %v3596_v5  ;;  %v3600_v8 = vld [vmem:[#allocation2 + $0xa4] ss:$16 sps:$4 sm:$0xff]   ;;  %v3604_v10 = vld [vmem:[#allocation2 + $0xa0] ss:$16 sps:$4 sm:$0xff]  }
  0x21   :  { %v3602_v9 = vld [vmem:[#allocation2 + $0x2a4] ss:$16 sps:$4 sm:$0xff]   ;;  %v3605_v11 = vld [vmem:[#allocation2 + $0x2a0] ss:$16 sps:$4 sm:$0xff]  }
  0x22   :  { %1311 = vmatpush1.bf16.msra.mxu0 %v3598_v6  ;;  %v3606_v12 = vld [vmem:[#allocation2 + $0x84] ss:$16 sps:$4 sm:$0xff]   ;;  %v3610_v14 = vld [vmem:[#allocation2 + $0x80] ss:$16 sps:$4 sm:$0xff]  }
  0x23   :  { %1364 = vmatpush1.bf16.msra.mxu1 %v3599_v7  ;;  %1312 = vmatprep.subr.bf16.mxu0 %v3600_v8  ;;  %v3608_v13 = vld [vmem:[#allocation2 + $0x284] ss:$16 sps:$4 sm:$0xff]   ;;  %v3611_v15 = vld [vmem:[#allocation2 + $0x280] ss:$16 sps:$4 sm:$0xff]   ;;  %v68_v7 = vld [vmem:[%s4703_s0 + $0x38] sm:$0xff] }
  0x24   :  { %1365 = vmatprep.subr.bf16.mxu1 %v3602_v9  ;;  %v3612_v16 = vld [vmem:[#allocation2 + $0x64] ss:$16 sps:$4 sm:$0xff]   ;;  %v3616_v18 = vld [vmem:[#allocation2 + $0x60] ss:$16 sps:$4 sm:$0xff]   ;;  %v70_v9 = vld [vmem:[%s4703_s0 + $0x48] sm:$0xff] }
  0x25   :  { %v3614_v17 = vld [vmem:[#allocation2 + $0x264] ss:$16 sps:$4 sm:$0xff]   ;;  %v3617_v19 = vld [vmem:[#allocation2 + $0x260] ss:$16 sps:$4 sm:$0xff]  }
  0x26   :  { %1313 = vmatpush1.bf16.msra.mxu0 %v3604_v10  ;;  %v3618_v20 = vld [vmem:[#allocation2 + $0x44] ss:$16 sps:$4 sm:$0xff]   ;;  %v3622_v22 = vld [vmem:[#allocation2 + $0x40] ss:$16 sps:$4 sm:$0xff]  }
  0x27   :  { %1366 = vmatpush1.bf16.msra.mxu1 %v3605_v11  ;;  %1314 = vmatprep.subr.bf16.mxu0 %v3606_v12  ;;  %v3620_v21 = vld [vmem:[#allocation2 + $0x244] ss:$16 sps:$4 sm:$0xff]   ;;  %v3623_v23 = vld [vmem:[#allocation2 + $0x240] ss:$16 sps:$4 sm:$0xff]   ;;  %v76_v12 = vld [vmem:[%s4703_s0 + $0x78] sm:$0xff] }
  0x28   :  { %1367 = vmatprep.subr.bf16.mxu1 %v3608_v13  ;;  %v3624_v24 = vld [vmem:[#allocation2 + $0x24] ss:$16 sps:$4 sm:$0xff]   ;;  %v3628_v26 = vld [vmem:[#allocation2 + $0x20] ss:$16 sps:$4 sm:$0xff]  }
  0x29   :  { %v3626_v25 = vld [vmem:[#allocation2 + $0x224] ss:$16 sps:$4 sm:$0xff]   ;;  %v3629_v27 = vld [vmem:[#allocation2 + $0x220] ss:$16 sps:$4 sm:$0xff]  }
  0x2a   :  { %1315 = vmatpush1.bf16.msra.mxu0 %v3610_v14  ;;  %v3630_v28 = vld [vmem:[#allocation2 + $0x4] ss:$16 sps:$4 sm:$0xff]   ;;  %v3634_v30 = vld [vmem:[#allocation2] ss:$16 sps:$4 sm:$0xff]   ;;  %v78_v14 = vld [vmem:[%s4703_s0 + $0x88] sm:$0xff] }
  0x2b   :  { %1368 = vmatpush1.bf16.msra.mxu1 %v3611_v15  ;;  %1316 = vmatprep.subr.bf16.mxu0 %v3612_v16  ;;  %v3632_v29 = vld [vmem:[#allocation2 + $0x204] ss:$16 sps:$4 sm:$0xff]   ;;  %v3635_v31 = vld [vmem:[#allocation2 + $0x200] ss:$16 sps:$4 sm:$0xff]  }
  0x2c   :  { %1369 = vmatprep.subr.bf16.mxu1 %v3614_v17  ;;  %v3636_v32 = vld [vmem:[#allocation2 + $0x1e4] ss:$16 sps:$4 sm:$0xff]   ;;  %v3640_v34 = vld [vmem:[#allocation2 + $0x1e0] ss:$16 sps:$4 sm:$0xff]  }
  0x2d   :  { %v3638_v33 = vld [vmem:[#allocation2 + $0x3e4] ss:$16 sps:$4 sm:$0xff]   ;;  %v3641_v35 = vld [vmem:[#allocation2 + $0x3e0] ss:$16 sps:$4 sm:$0xff]  }
  0x2e   :  { %1317 = vmatpush1.bf16.msra.mxu0 %v3616_v18  ;;  %v3642_v36 = vld [vmem:[#allocation2 + $0x1c4] ss:$16 sps:$4 sm:$0xff]   ;;  %v3646_v38 = vld [vmem:[#allocation2 + $0x1c0] ss:$16 sps:$4 sm:$0xff]  }
  0x2f   :  { %1370 = vmatpush1.bf16.msra.mxu1 %v3617_v19  ;;  %1318 = vmatprep.subr.bf16.mxu0 %v3618_v20  ;;  %v3644_v37 = vld [vmem:[#allocation2 + $0x3c4] ss:$16 sps:$4 sm:$0xff]   ;;  %v3647_v39 = vld [vmem:[#allocation2 + $0x3c0] ss:$16 sps:$4 sm:$0xff]  }
  0x30   :  { %1371 = vmatprep.subr.bf16.mxu1 %v3620_v21  ;;  %v3648_v40 = vld [vmem:[#allocation2 + $0x1a4] ss:$16 sps:$4 sm:$0xff]   ;;  %v3652_v42 = vld [vmem:[#allocation2 + $0x1a0] ss:$16 sps:$4 sm:$0xff]  }
  0x31   :  { %v3650_v41 = vld [vmem:[#allocation2 + $0x3a4] ss:$16 sps:$4 sm:$0xff]   ;;  %v3653_v43 = vld [vmem:[#allocation2 + $0x3a0] ss:$16 sps:$4 sm:$0xff]  }
  0x32   :  { %1319 = vmatpush1.bf16.msra.mxu0 %v3622_v22  ;;  %v3654_v44 = vld [vmem:[#allocation2 + $0x184] ss:$16 sps:$4 sm:$0xff]   ;;  %v3658_v50 = vld [vmem:[#allocation2 + $0x180] ss:$16 sps:$4 sm:$0xff]  }
  0x33   :  { %1372 = vmatpush1.bf16.msra.mxu1 %v3623_v23  ;;  %1320 = vmatprep.subr.bf16.mxu0 %v3624_v24  ;;  %v3656_v45 = vld [vmem:[#allocation2 + $0x384] ss:$16 sps:$4 sm:$0xff]   ;;  %v3659_v51 = vld [vmem:[#allocation2 + $0x380] ss:$16 sps:$4 sm:$0xff]  }
  0x34   :  { %1373 = vmatprep.subr.bf16.mxu1 %v3626_v25  ;;  %v69_v47 = vld [vmem:[%s4703_s0 + $0x40] sm:$0xff]  ;;  %v71_v49 = vld [vmem:[%s4703_s0 + $0x50] sm:$0xff]  ;;  %v3701_v25 = vld [vmem:[#allocation2 + $0xec] ss:$16 sps:$4 sm:$0xff]  }
  0x35   :  { %v3660_v52 = vld [vmem:[#allocation2 + $0x164] ss:$16 sps:$4 sm:$0xff]   ;;  %v4161_v53 = vpack.c.bf16 %v69_v47, %v62_v46  ;;  %v4163_v54 = vpack.c.bf16 %v71_v49, %v64_v48  ;;  %v3664_v56 = vld [vmem:[#allocation2 + $0x160] ss:$16 sps:$4 sm:$0xff]   ;;  %v3713_v46 = vld [vmem:[#allocation2 + $0xac] ss:$16 sps:$4 sm:$0xff]  }
  0x36   :  { %1321 = vmatpush1.bf16.msra.mxu0 %v3628_v26  ;;  %v3662_v55 = vld [vmem:[#allocation2 + $0x364] ss:$16 sps:$4 sm:$0xff]   ;;  %v3665_v57 = vld [vmem:[#allocation2 + $0x360] ss:$16 sps:$4 sm:$0xff]   ;;  %v82_v26 = vld [vmem:[%s4703_s0 + $0xa8] sm:$0xff] }
  0x37   :  { %1374 = vmatpush1.bf16.msra.mxu1 %v3629_v27  ;;  %1322 = vmatprep.subr.bf16.mxu0 %v3630_v28  ;;  %v3666_v58 = vld [vmem:[#allocation2 + $0x144] ss:$16 sps:$4 sm:$0xff]   ;;  %v3670_v60 = vld [vmem:[#allocation2 + $0x140] ss:$16 sps:$4 sm:$0xff]   ;;  %v84_v28 = vld [vmem:[%s4703_s0 + $0xb8] sm:$0xff] }
  0x38   :  { %1375 = vmatprep.subr.bf16.mxu1 %v3632_v29  ;;  %1340 = vmatprep.mubr.bf16.mxu0 %v4161_v53  ;;  %v3668_v59 = vld [vmem:[#allocation2 + $0x344] ss:$16 sps:$4 sm:$0xff]   ;;  %v3671_v61 = vld [vmem:[#allocation2 + $0x340] ss:$16 sps:$4 sm:$0xff]   ;;  %v3711_v48 = vld [vmem:[#allocation2 + $0xa8] ss:$16 sps:$4 sm:$0xff]  }
  0x39   :  { %1393 = vmatprep.mubr.bf16.mxu1 %v4163_v54  ;;  %v3672_v62 = vld [vmem:[#allocation2 + $0x124] ss:$16 sps:$4 sm:$0xff]   ;;  %v3676_v0 = vld [vmem:[#allocation2 + $0x120] ss:$16 sps:$4 sm:$0xff]   ;;  %v66_v49 = vld [vmem:[%s4703_s0 + $0x28] sm:$0xff] }
  0x3a   :  { %1323 = vmatpush1.bf16.msra.mxu0 %v3634_v30  ;;  %v3674_v63 = vld [vmem:[#allocation2 + $0x324] ss:$16 sps:$4 sm:$0xff]   ;;  %v3677_v1 = vld [vmem:[#allocation2 + $0x320] ss:$16 sps:$4 sm:$0xff]  }
  0x3b   :  { %1376 = vmatpush1.bf16.msra.mxu1 %v3635_v31  ;;  %1324 = vmatprep.subr.bf16.mxu0 %v3636_v32  ;;  %v3678_v2 = vld [vmem:[#allocation2 + $0x104] ss:$16 sps:$4 sm:$0xff]   ;;  %v3682_v4 = vld [vmem:[#allocation2 + $0x100] ss:$16 sps:$4 sm:$0xff]  }
  0x3c   :  { %1377 = vmatprep.subr.bf16.mxu1 %v3638_v33  ;;  %v3680_v3 = vld [vmem:[#allocation2 + $0x304] ss:$16 sps:$4 sm:$0xff]   ;;  %v3683_v5 = vld [vmem:[#allocation2 + $0x300] ss:$16 sps:$4 sm:$0xff]  }
  0x3d   :  { %v61_v6 = vld [vmem:[%s4703_s0] sm:$0xff]  ;;  %v63_v8 = vld [vmem:[%s4703_s0 + $0x10] sm:$0xff] }
  0x3e   :  { %1325 = vmatpush2.bf16.msra.mxu0 %v3640_v34  ;;  %v3686_v10 = vld [vmem:[#allocation2 + $0x4e4] ss:$16 sps:$4 sm:$0xff]   ;;  %v4188_v15 = vpack.c.bf16 %v68_v7, %v61_v6  ;;  %v4190_v16 = vpack.c.bf16 %v70_v9, %v63_v8  ;;  %v3684_v18 = vld [vmem:[#allocation2 + $0x4e0] ss:$16 sps:$4 sm:$0xff]   ;;  %v3737_v6 = vld [vmem:[#allocation2 + $0x2c] ss:$16 sps:$4 sm:$0xff]  }
  0x3f   :  { %1378 = vmatpush2.bf16.msra.mxu1 %v3641_v35  ;;  %1326 = vmatprep.subr.bf16.mxu0 %v3642_v36  ;;  %v3689_v11 = vld [vmem:[#allocation2 + $0x604] ss:$16 sps:$4 sm:$0xff]   ;;  %v3687_v19 = vld [vmem:[#allocation2 + $0x600] ss:$16 sps:$4 sm:$0xff]   ;;  %v4092_v35 = vmov 0  }
  0x40   :  { %1379 = vmatprep.subr.bf16.mxu1 %v3644_v37  ;;  %v83_v13 = vld [vmem:[%s4703_s0 + $0xb0] sm:$0xff]  ;;  %v85_v17 = vld [vmem:[%s4703_s0 + $0xc0] sm:$0xff]  ;;  %v74_v37 = vld [vmem:[%s4703_s0 + $0x68] sm:$0xff] }
  0x41   :  { %v3692_v20 = vld [vmem:[#allocation2 + $0x4c4] ss:$16 sps:$4 sm:$0xff]   ;;  %v4195_v21 = vpack.c.bf16 %v83_v13, %v76_v12  ;;  %v3690_v22 = vld [vmem:[#allocation2 + $0x4c0] ss:$16 sps:$4 sm:$0xff]   ;;  %v4197_v23 = vpack.c.bf16 %v85_v17, %v78_v14  ;;  %v3735_v8 = vld [vmem:[#allocation2 + $0x28] ss:$16 sps:$4 sm:$0xff]  }
  0x42   :  { %1327 = vmatpush2.bf16.msra.mxu0 %v3646_v38  ;;  %v75_v24 = vld [vmem:[%s4703_s0 + $0x70] sm:$0xff]  ;;  %v77_v27 = vld [vmem:[%s4703_s0 + $0x80] sm:$0xff]  ;;  %v3749_v13 = vld [vmem:[#allocation2 + $0x1ec] ss:$16 sps:$4 sm:$0xff]  }
  0x43   :  { %1380 = vmatpush2.bf16.msra.mxu1 %v3647_v39  ;;  %1328 = vmatprep.subr.bf16.mxu0 %v3648_v40  ;;  %v3695_v29 = vld [vmem:[#allocation2 + $0x4a4] ss:$16 sps:$4 sm:$0xff]   ;;  %v4215_v30 = vpack.c.bf16 %v82_v26, %v75_v24  ;;  %v4217_v31 = vpack.c.bf16 %v84_v28, %v77_v27  ;;  %v3693_v32 = vld [vmem:[#allocation2 + $0x4a0] ss:$16 sps:$4 sm:$0xff]   ;;  %v3699_v40 = vld [vmem:[#allocation2 + $0xe8] ss:$16 sps:$4 sm:$0xff]  }
  0x44   :  { %1381 = vmatprep.subr.bf16.mxu1 %v3650_v41  ;;  %v3698_v33 = vld [vmem:[#allocation2 + $0x484] ss:$16 sps:$4 sm:$0xff]   ;;  %v3696_v34 = vld [vmem:[#allocation2 + $0x480] ss:$16 sps:$4 sm:$0xff]   ;;  %v3747_v17 = vld [vmem:[#allocation2 + $0x1e8] ss:$16 sps:$4 sm:$0xff]  }
  0x45   :  { %v67_v36 = vld [vmem:[%s4703_s0 + $0x30] sm:$0xff]  ;;  %v3759_v27 = vld [vmem:[#allocation2 + $0x1a8] ss:$16 sps:$4 sm:$0xff]  }
  0x46   :  { %1329 = vmatpush2.bf16.msra.mxu0 %v3652_v42  ;;  %v3704_v38 = vld [vmem:[#allocation2 + $0x464] ss:$16 sps:$4 sm:$0xff]   ;;  %v4228_v39 = vpack.c.bf16 %v74_v37, %v67_v36  ;;  %v3702_v41 = vld [vmem:[#allocation2 + $0x460] ss:$16 sps:$4 sm:$0xff]   ;;  %v3707_v42 = vld [vmem:[#allocation2 + $0xcc] ss:$16 sps:$4 sm:$0xff]  }
  0x47   :  { %1382 = vmatpush2.bf16.msra.mxu1 %v3653_v43  ;;  %1330 = vmatprep.subr.bf16.mxu0 %v3654_v44  ;;  %v3710_v43 = vld [vmem:[#allocation2 + $0x444] ss:$16 sps:$4 sm:$0xff]   ;;  %v3705_v44 = vld [vmem:[#allocation2 + $0xc8] ss:$16 sps:$4 sm:$0xff]   ;;  %v3738_v9 = vld [vmem:[#allocation2 + $0x5a0] ss:$16 sps:$4 sm:$0xff]  }
  0x48   :  { %1383 = vmatprep.subr.bf16.mxu1 %v3656_v45  ;;  %v3708_v45 = vld [vmem:[#allocation2 + $0x440] ss:$16 sps:$4 sm:$0xff]   ;;  %v3716_v47 = vld [vmem:[#allocation2 + $0x424] ss:$16 sps:$4 sm:$0xff]   ;;  %v3773_v36 = vld [vmem:[#allocation2 + $0x16c] ss:$16 sps:$4 sm:$0xff]  }
  0x49   :  { %v3740_v7 = vld [vmem:[#allocation2 + $0x5a4] ss:$16 sps:$4 sm:$0xff]   ;;  %v3744_v12 = vld [vmem:[#allocation2 + $0x580] ss:$16 sps:$4 sm:$0xff]  }
  0x4a   :  { %1331 = vmatpush2.bf16.msra.mxu0 %v3658_v50  ;;  %v73_v50 = vld [vmem:[%s4703_s0 + $0x60] sm:$0xff] }
  0x4b   :  { %1384 = vmatpush2.bf16.msra.mxu1 %v3659_v51  ;;  %1332 = vmatprep.subr.bf16.mxu0 %v3660_v52  ;;  %v3714_v51 = vld [vmem:[#allocation2 + $0x420] ss:$16 sps:$4 sm:$0xff]   ;;  %v4239_v52 = vpack.c.bf16 %v73_v50, %v66_v49  ;;  %v3752_v14 = vld [vmem:[#allocation2 + $0x564] ss:$16 sps:$4 sm:$0xff]   ;;  %v3780_v49 = vld [vmem:[#allocation2 + $0x2c8] ss:$16 sps:$4 sm:$0xff]  }
  0x4c   :  { %1385 = vmatprep.subr.bf16.mxu1 %v3662_v55  ;;  %v3719_v55 = vld [vmem:[#allocation2 + $0x8c] ss:$16 sps:$4 sm:$0xff]   ;;  %v3756_v24 = vld [vmem:[#allocation2 + $0x540] ss:$16 sps:$4 sm:$0xff]   ;;  %v3764_v26 = vld [vmem:[#allocation2 + $0x524] ss:$16 sps:$4 sm:$0xff]  }
  0x4d   :  { %v3762_v28 = vld [vmem:[#allocation2 + $0x520] ss:$16 sps:$4 sm:$0xff]  }
  0x4e   :  { %1333 = vmatpush2.bf16.msra.mxu0 %v3664_v56  ;;  %v3722_v56 = vld [vmem:[#allocation2 + $0x404] ss:$16 sps:$4 sm:$0xff]  }
  0x4f   :  { %1386 = vmatpush2.bf16.msra.mxu1 %v3665_v57  ;;  %1334 = vmatprep.subr.bf16.mxu0 %v3666_v58  ;;  %v3717_v57 = vld [vmem:[#allocation2 + $0x88] ss:$16 sps:$4 sm:$0xff]   ;;  %v3720_v58 = vld [vmem:[#allocation2 + $0x400] ss:$16 sps:$4 sm:$0xff]  }
  0x50   :  { %1387 = vmatprep.subr.bf16.mxu1 %v3668_v59  ;;  %v81_v59 = vld [vmem:[%s4703_s0 + $0xa0] sm:$0xff] }
  0x51   :  { %v65_v37 = vld [vmem:[%s4703_s0 + $0x20] sm:$0xff] }
  0x52   :  { %1335 = vmatpush2.bf16.msra.mxu0 %v3670_v60  ;;  %v88_v60 = vld [vmem:[%s4703_s0 + $0xd8] sm:$0xff] }
  0x53   :  { %1388 = vmatpush2.bf16.msra.mxu1 %v3671_v61  ;;  %1336 = vmatprep.subr.bf16.mxu0 %v3672_v62  ;;  %v3725_v61 = vld [vmem:[#allocation2 + $0x6c] ss:$16 sps:$4 sm:$0xff]   ;;  %v4248_v62 = vpack.c.bf16 %v88_v60, %v81_v59  ;;  %v3786_v60 = vld [vmem:[#allocation2 + $0x2a8] ss:$16 sps:$4 sm:$0xff]  }
  0x54   :  { %1389 = vmatprep.subr.bf16.mxu1 %v3674_v63  ;;  %v3728_v63 = vld [vmem:[#allocation2 + $0x5e4] ss:$16 sps:$4 sm:$0xff]  }
  0x56   :  { %1337 = vmatpush2.bf16.msra.mxu0 %v3676_v0  ;;  %v3723_v0 = vld [vmem:[#allocation2 + $0x68] ss:$16 sps:$4 sm:$0xff]  }
  0x57   :  { %1390 = vmatpush2.bf16.msra.mxu1 %v3677_v1  ;;  %1338 = vmatprep.subr.bf16.mxu0 %v3678_v2  ;;  %v3726_v1 = vld [vmem:[#allocation2 + $0x5e0] ss:$16 sps:$4 sm:$0xff]   ;;  %v3731_v2 = vld [vmem:[#allocation2 + $0x4c] ss:$16 sps:$4 sm:$0xff]  }
  0x58   :  { %1391 = vmatprep.subr.bf16.mxu1 %v3680_v3  ;;  %v3734_v3 = vld [vmem:[#allocation2 + $0x5c4] ss:$16 sps:$4 sm:$0xff]  }
  0x5a   :  { %1339 = vmatpush2.bf16.msra.mxu0 %v3682_v4  ;;  %v3729_v4 = vld [vmem:[#allocation2 + $0x48] ss:$16 sps:$4 sm:$0xff]  }
  0x5b   :  { %1392 = vmatpush2.bf16.msra.mxu1 %v3683_v5  ;;  %1414 = vmatprep.subr.bf16.mxu0 %v3686_v10  ;;  %v3732_v5 = vld [vmem:[#allocation2 + $0x5c0] ss:$16 sps:$4 sm:$0xff]   ;;  %v3746_v10 = vld [vmem:[#allocation2 + $0x584] ss:$16 sps:$4 sm:$0xff]  }
  0x5c   :  { %1481 = vmatprep.subr.bf16.mxu1 %v3689_v11  ;;  %v3741_v11 = vld [vmem:[#allocation2 + $0x8] ss:$16 sps:$4 sm:$0xff]  }
  0x5d   :  { %1341 = vmatmul.mubr.bf16.vlgmr.msra.gmra.mxu0 %v4188_v15 }
  0x5e   :  { %1394 = vmatmul.mubr.bf16.vlgmr.msra.gmra.mxu1 %v4190_v16  ;;  %1415 = vmatpush1.bf16.msra.mxu0 %v3684_v18  ;;  %v3750_v18 = vld [vmem:[#allocation2 + $0x560] ss:$16 sps:$4 sm:$0xff]  }
  0x5f   :  { %1482 = vmatpush1.bf16.msra.mxu1 %v3687_v19  ;;  %1416 = vmatprep.subr.bf16.mxu0 %v3692_v20  ;;  %v3755_v19 = vld [vmem:[#allocation2 + $0x1cc] ss:$16 sps:$4 sm:$0xff]   ;;  %v3758_v20 = vld [vmem:[#allocation2 + $0x544] ss:$16 sps:$4 sm:$0xff]  }
  0x60   :  { %1350 = vmatprep.mubr.bf16.mxu0 %v4195_v21  ;;  %1403 = vmatprep.mubr.bf16.mxu1 %v4197_v23 }
  0x61   :  { %1520 = vmatprep.subr.bf16.mxu1 %v3701_v25  ;;  %v3761_v25 = vld [vmem:[#allocation2 + $0x1ac] ss:$16 sps:$4 sm:$0xff]  }
  0x62   :  { %1417 = vmatpush1.bf16.msra.mxu0 %v3690_v22  ;;  %v3753_v22 = vld [vmem:[#allocation2 + $0x1c8] ss:$16 sps:$4 sm:$0xff]  }
  0x63   :  { %1418 = vmatprep.subr.bf16.mxu0 %v3695_v29  ;;  %v3767_v29 = vld [vmem:[#allocation2 + $0x18c] ss:$16 sps:$4 sm:$0xff]  }
  0x65   :  { %1351 = vmatmul.mubr.bf16.gmra.mxu0 %v4215_v30 }
  0x66   :  { %1404 = vmatmul.mubr.bf16.gmra.mxu1 %v4217_v31  ;;  %1419 = vmatpush1.bf16.msra.mxu0 %v3693_v32  ;;  %v3770_v32 = vld [vmem:[#allocation2 + $0x504] ss:$16 sps:$4 sm:$0xff]  }
  0x67   :  { %1499 = vmatprep.mubr.bf16.mxu1 %v4092_v35  ;;  %1420 = vmatprep.subr.bf16.mxu0 %v3698_v33  ;;  %v3765_v33 = vld [vmem:[#allocation2 + $0x188] ss:$16 sps:$4 sm:$0xff]  }
  0x68   :  { %1446 = vmatprep.mubr.bf16.mxu0 %v4239_v52 }
  0x6a   :  { %1421 = vmatpush1.bf16.msra.mxu0 %v3696_v34  ;;  %v3768_v34 = vld [vmem:[#allocation2 + $0x500] ss:$16 sps:$4 sm:$0xff]  }
  0x6b   :  { %1422 = vmatprep.subr.bf16.mxu0 %v3704_v38  ;;  %v72_v38 = vld [vmem:[%s4703_s0 + $0x58] sm:$0xff] }
  0x6e   :  { %3284 = vmatmul.mubr.msk.bf16.vlgmr.msra.gmra.mxu1 %vm1301_vm0, %v4228_v39  ;;  %1423 = vmatpush1.bf16.msra.mxu0 %v3702_v41  ;;  %v3771_v41 = vld [vmem:[#allocation2 + $0x168] ss:$16 sps:$4 sm:$0xff]  }
  0x6f   :  { %1521 = vmatpush1.bf16.msra.mxu1 %v3699_v40  ;;  %1424 = vmatprep.subr.bf16.mxu0 %v3710_v43  ;;  %v3776_v40 = vld [vmem:[#allocation2 + $0x2ec] ss:$16 sps:$4 sm:$0xff]   ;;  %v4259_v43 = vpack.c.bf16 %v72_v38, %v65_v37  ;;  %v3843_v37 = vld [vmem:[#allocation2 + $0x5e8] ss:$16 sps:$4 sm:$0xff]  }
  0x70   :  { %1522 = vmatprep.subr.bf16.mxu1 %v3707_v42  ;;  %1509 = vmatprep.mubr.bf16.mxu1 %v4092_v35  ;;  %v3774_v42 = vld [vmem:[#allocation2 + $0x2e8] ss:$16 sps:$4 sm:$0xff]  }
  0x71   :  { %v3846_v38 = vld [vmem:[#allocation2 + $0x368] ss:$16 sps:$4 sm:$0xff]  }
  0x72   :  { %1425 = vmatpush1.bf16.msra.mxu0 %v3708_v45  ;;  %v87_v45 = vld [vmem:[%s4703_s0 + $0xd0] sm:$0xff] }
  0x73   :  { %1523 = vmatpush1.bf16.msra.mxu1 %v3705_v44  ;;  %1426 = vmatprep.subr.bf16.mxu0 %v3716_v47  ;;  %v80_v44 = vld [vmem:[%s4703_s0 + $0x98] sm:$0xff] }
  0x74   :  { %1524 = vmatprep.subr.bf16.mxu1 %v3713_v46  ;;  %v3779_v46 = vld [vmem:[#allocation2 + $0x14c] ss:$16 sps:$4 sm:$0xff]   ;;  %v4267_v50 = vpack.c.bf16 %v87_v45, %v80_v44  ;;  %v3852_v44 = vld [vmem:[#allocation2 + $0x348] ss:$16 sps:$4 sm:$0xff]  }
  0x75   :  { %v3782_v47 = vld [vmem:[#allocation2 + $0x2cc] ss:$16 sps:$4 sm:$0xff]  }
  0x76   :  { %1427 = vmatpush1.bf16.msra.mxu0 %v3714_v51  ;;  %3285 = vmatmul.mubr.msk.bf16.gmra.mxu1 %vm1301_vm0, %v4248_v62  ;;  %v3785_v51 = vld [vmem:[#allocation2 + $0x12c] ss:$16 sps:$4 sm:$0xff]  }
  0x77   :  { %1525 = vmatpush1.bf16.msra.mxu1 %v3711_v48  ;;  %1428 = vmatprep.subr.bf16.mxu0 %v3722_v56  ;;  %v3777_v48 = vld [vmem:[#allocation2 + $0x148] ss:$16 sps:$4 sm:$0xff]   ;;  %v3857_v45 = vld [vmem:[#allocation2 + $0x5ac] ss:$16 sps:$4 sm:$0xff]  }
  0x78   :  { %1526 = vmatprep.subr.bf16.mxu1 %v3719_v55  ;;  %1552 = vmatprep.mubr.bf16.mxu1 %v4161_v53  ;;  %v3743_v53 = vld [vmem:[#allocation2 + $0xc] ss:$16 sps:$4 sm:$0xff]   ;;  %v79_v55 = vld [vmem:[%s4703_s0 + $0x90] sm:$0xff] }
  0x79   :  { %v86_v56 = vld [vmem:[%s4703_s0 + $0xc8] sm:$0xff] }
  0x7a   :  { %1429 = vmatpush1.bf16.msra.mxu0 %v3720_v58  ;;  %v3783_v58 = vld [vmem:[#allocation2 + $0x128] ss:$16 sps:$4 sm:$0xff]   ;;  %v4277_v59 = vpack.c.bf16 %v86_v56, %v79_v55 }
  0x7b   :  { %1527 = vmatpush1.bf16.msra.mxu1 %v3717_v57  ;;  %1430 = vmatprep.subr.bf16.mxu0 %v3728_v63  ;;  %v3788_v57 = vld [vmem:[#allocation2 + $0x2ac] ss:$16 sps:$4 sm:$0xff]   ;;  %v3861_v55 = vld [vmem:[#allocation2 + $0x588] ss:$16 sps:$4 sm:$0xff]  }
  0x7c   :  { %1528 = vmatprep.subr.bf16.mxu1 %v3725_v61  ;;  %v3791_v61 = vld [vmem:[#allocation2 + $0x10c] ss:$16 sps:$4 sm:$0xff]   ;;  %v3864_v56 = vld [vmem:[#allocation2 + $0x308] ss:$16 sps:$4 sm:$0xff]  }
  0x7d   :  { %v3794_v63 = vld [vmem:[#allocation2 + $0x28c] ss:$16 sps:$4 sm:$0xff]  }
  0x7e   :  { %1431 = vmatpush2.bf16.msra.mxu0 %v3726_v1  ;;  %v3792_v1 = vld [vmem:[#allocation2 + $0x288] ss:$16 sps:$4 sm:$0xff]  }
  0x7f   :  { %1529 = vmatpush1.bf16.msra.mxu1 %v3723_v0  ;;  %1432 = vmatprep.subr.bf16.mxu0 %v3734_v3  ;;  %v3789_v0 = vld [vmem:[#allocation2 + $0x108] ss:$16 sps:$4 sm:$0xff]   ;;  %v3800_v3 = vld [vmem:[#allocation2 + $0x26c] ss:$16 sps:$4 sm:$0xff]  }
  0x80   :  { %1530 = vmatprep.subr.bf16.mxu1 %v3731_v2  ;;  %v3797_v2 = vld [vmem:[#allocation2 + $0x4ec] ss:$16 sps:$4 sm:$0xff]  }
  0x82   :  { %1433 = vmatpush2.bf16.msra.mxu0 %v3732_v5  ;;  %v3798_v5 = vld [vmem:[#allocation2 + $0x268] ss:$16 sps:$4 sm:$0xff]  }
  0x83   :  { %1531 = vmatpush1.bf16.msra.mxu1 %v3729_v4  ;;  %1434 = vmatprep.subr.bf16.mxu0 %v3740_v7  ;;  %v3795_v4 = vld [vmem:[#allocation2 + $0x4e8] ss:$16 sps:$4 sm:$0xff]   ;;  %v3806_v7 = vld [vmem:[#allocation2 + $0x24c] ss:$16 sps:$4 sm:$0xff]  }
  0x84   :  { %1532 = vmatprep.subr.bf16.mxu1 %v3737_v6  ;;  %v3803_v6 = vld [vmem:[#allocation2 + $0x4cc] ss:$16 sps:$4 sm:$0xff]  }
  0x86   :  { %1435 = vmatpush2.bf16.msra.mxu0 %v3738_v9  ;;  %v3804_v9 = vld [vmem:[#allocation2 + $0x248] ss:$16 sps:$4 sm:$0xff]  }
  0x87   :  { %1533 = vmatpush1.bf16.msra.mxu1 %v3735_v8  ;;  %1436 = vmatprep.subr.bf16.mxu0 %v3746_v10  ;;  %v3801_v8 = vld [vmem:[#allocation2 + $0x4c8] ss:$16 sps:$4 sm:$0xff]   ;;  %v3812_v10 = vld [vmem:[#allocation2 + $0x22c] ss:$16 sps:$4 sm:$0xff]  }
  0x88   :  { %1534 = vmatprep.subr.bf16.mxu1 %v3743_v53  ;;  %v3809_v53 = vld [vmem:[#allocation2 + $0x4ac] ss:$16 sps:$4 sm:$0xff]  }
  0x8a   :  { %1437 = vmatpush2.bf16.msra.mxu0 %v3744_v12  ;;  %v3810_v12 = vld [vmem:[#allocation2 + $0x228] ss:$16 sps:$4 sm:$0xff]  }
  0x8b   :  { %1535 = vmatpush1.bf16.msra.mxu1 %v3741_v11  ;;  %1438 = vmatprep.subr.bf16.mxu0 %v3752_v14  ;;  %v3807_v11 = vld [vmem:[#allocation2 + $0x4a8] ss:$16 sps:$4 sm:$0xff]  }
  0x8c   :  { %1536 = vmatprep.subr.bf16.mxu1 %v3749_v13  ;;  %v3818_v13 = vld [vmem:[#allocation2 + $0x20c] ss:$16 sps:$4 sm:$0xff]   ;;  %v3816_v14 = vld [vmem:[#allocation2 + $0x208] ss:$16 sps:$4 sm:$0xff]  }
  0x8e   :  { %1439 = vmatpush2.bf16.msra.mxu0 %v3750_v18  ;;  %v3824_v18 = vld [vmem:[#allocation2 + $0x3ec] ss:$16 sps:$4 sm:$0xff]  }
  0x8f   :  { %1537 = vmatpush2.bf16.msra.mxu1 %v3747_v17  ;;  %1440 = vmatprep.subr.bf16.mxu0 %v3758_v20  ;;  %v3821_v17 = vld [vmem:[#allocation2 + $0x46c] ss:$16 sps:$4 sm:$0xff]  }
  0x90   :  { %1538 = vmatprep.subr.bf16.mxu1 %v3755_v19  ;;  %v3819_v19 = vld [vmem:[#allocation2 + $0x468] ss:$16 sps:$4 sm:$0xff]   ;;  %v3827_v20 = vld [vmem:[#allocation2 + $0x44c] ss:$16 sps:$4 sm:$0xff]  }
  0x92   :  { %1441 = vmatpush2.bf16.msra.mxu0 %v3756_v24  ;;  %v3825_v24 = vld [vmem:[#allocation2 + $0x448] ss:$16 sps:$4 sm:$0xff]  }
  0x93   :  { %1539 = vmatpush2.bf16.msra.mxu1 %v3753_v22  ;;  %1442 = vmatprep.subr.bf16.mxu0 %v3764_v26  ;;  %v3830_v22 = vld [vmem:[#allocation2 + $0x3cc] ss:$16 sps:$4 sm:$0xff]  }
  0x94   :  { %1540 = vmatprep.subr.bf16.mxu1 %v3761_v25  ;;  %v3833_v25 = vld [vmem:[#allocation2 + $0x42c] ss:$16 sps:$4 sm:$0xff]  }
  0x95   :  { %v3836_v26 = vld [vmem:[#allocation2 + $0x3ac] ss:$16 sps:$4 sm:$0xff]  }
  0x96   :  { %1443 = vmatpush2.bf16.msra.mxu0 %v3762_v28  ;;  %v3834_v28 = vld [vmem:[#allocation2 + $0x3a8] ss:$16 sps:$4 sm:$0xff]  }
  0x97   :  { %1541 = vmatpush2.bf16.msra.mxu1 %v3759_v27  ;;  %1444 = vmatprep.subr.bf16.mxu0 %v3770_v32  ;;  %v3831_v27 = vld [vmem:[#allocation2 + $0x428] ss:$16 sps:$4 sm:$0xff]  }
  0x98   :  { %1542 = vmatprep.subr.bf16.mxu1 %v3767_v29  ;;  %v3839_v29 = vld [vmem:[#allocation2 + $0x40c] ss:$16 sps:$4 sm:$0xff]   ;;  %v3837_v32 = vld [vmem:[#allocation2 + $0x408] ss:$16 sps:$4 sm:$0xff]  }
  0x9a   :  { %1445 = vmatpush2.bf16.msra.mxu0 %v3768_v34  ;;  %v3845_v34 = vld [vmem:[#allocation2 + $0x5ec] ss:$16 sps:$4 sm:$0xff]  }
  0x9b   :  { %1543 = vmatpush2.bf16.msra.mxu1 %v3765_v33  ;;  %1573 = vmatprep.subr.bf16.mxu0 %v3776_v40  ;;  %v3840_v33 = vld [vmem:[#allocation2 + $0x388] ss:$16 sps:$4 sm:$0xff]   ;;  %v3851_v40 = vld [vmem:[#allocation2 + $0x5cc] ss:$16 sps:$4 sm:$0xff]  }
  0x9c   :  { %1544 = vmatprep.subr.bf16.mxu1 %v3773_v36  ;;  %v3848_v36 = vld [vmem:[#allocation2 + $0x36c] ss:$16 sps:$4 sm:$0xff]  }
  0x9d   :  { %1447 = vmatmul.mubr.bf16.vlgmr.msra.gmra.mxu0 %v4259_v43 }
  0x9e   :  { %1574 = vmatpush1.bf16.msra.mxu0 %v3774_v42  ;;  %1456 = vmatprep.mubr.bf16.mxu0 %v4267_v50  ;;  %v3849_v42 = vld [vmem:[#allocation2 + $0x5c8] ss:$16 sps:$4 sm:$0xff]  }
  0x9f   :  { %1545 = vmatpush2.bf16.msra.mxu1 %v3771_v41  ;;  %1575 = vmatprep.subr.bf16.mxu0 %v3782_v47  ;;  %v3854_v41 = vld [vmem:[#allocation2 + $0x34c] ss:$16 sps:$4 sm:$0xff]   ;;  %v3855_v47 = vld [vmem:[#allocation2 + $0x5a8] ss:$16 sps:$4 sm:$0xff]  }
  0xa0   :  { %1546 = vmatprep.subr.bf16.mxu1 %v3779_v46  ;;  %v3860_v46 = vld [vmem:[#allocation2 + $0x32c] ss:$16 sps:$4 sm:$0xff]  }
  0xa2   :  { %1576 = vmatpush1.bf16.msra.mxu0 %v3780_v49  ;;  %v3863_v49 = vld [vmem:[#allocation2 + $0x58c] ss:$16 sps:$4 sm:$0xff]  }
  0xa3   :  { %1547 = vmatpush2.bf16.msra.mxu1 %v3777_v48  ;;  %1577 = vmatprep.subr.bf16.mxu0 %v3788_v57  ;;  %v3858_v48 = vld [vmem:[#allocation2 + $0x328] ss:$16 sps:$4 sm:$0xff]   ;;  %v3869_v57 = vld [vmem:[#allocation2 + $0x56c] ss:$16 sps:$4 sm:$0xff]  }
  0xa4   :  { %1548 = vmatprep.subr.bf16.mxu1 %v3785_v51  ;;  %v3866_v51 = vld [vmem:[#allocation2 + $0x30c] ss:$16 sps:$4 sm:$0xff]  }
  0xa5   :  { %1457 = vmatmul.mubr.bf16.gmra.mxu0 %v4277_v59 }
  0xa6   :  { %1578 = vmatpush1.bf16.msra.mxu0 %v3786_v60  ;;  %1605 = vmatprep.mubr.bf16.mxu0 %v4163_v54  ;;  %v3815_v54 = vld [vmem:[#allocation2 + $0x48c] ss:$16 sps:$4 sm:$0xff]   ;;  %v3867_v60 = vld [vmem:[#allocation2 + $0x568] ss:$16 sps:$4 sm:$0xff]  }
  0xa7   :  { %1549 = vmatpush2.bf16.msra.mxu1 %v3783_v58  ;;  %1579 = vmatprep.subr.bf16.mxu0 %v3794_v63  ;;  %v3884_v58 = vld [vmem:[%s4706_s3 + $0xac] ss:$12 sps:$4 sm:$0xff]   ;;  %v3882_v63 = vld [vmem:[%s4706_s3 + $0xa8] ss:$12 sps:$4 sm:$0xff]  }
  0xa8   :  { %1550 = vmatprep.subr.bf16.mxu1 %v3791_v61  ;;  %v3872_v61 = vld [vmem:[#allocation2 + $0x54c] ss:$16 sps:$4 sm:$0xff]  }
  0xaa   :  { %1580 = vmatpush1.bf16.msra.mxu0 %v3792_v1  ;;  %v3870_v1 = vld [vmem:[#allocation2 + $0x548] ss:$16 sps:$4 sm:$0xff]  }
  0xab   :  { %1551 = vmatpush2.bf16.msra.mxu1 %v3789_v0  ;;  %1581 = vmatprep.subr.bf16.mxu0 %v3800_v3  ;;  %v3887_v0 = vld [vmem:[%s4706_s3 + $0x94] ss:$12 sps:$4 sm:$0xff]   ;;  %v3885_v3 = vld [vmem:[%s4706_s3 + $0x90] ss:$12 sps:$4 sm:$0xff]  }
  0xac   :  { %1626 = vmatprep.subr.bf16.mxu1 %v3797_v2  ;;  %v3875_v2 = vld [vmem:[#allocation2 + $0x52c] ss:$16 sps:$4 sm:$0xff]  }
  0xae   :  { %1553 = vmatmul.mubr.bf16.vlgmr.msra.gmra.mxu1 %v4188_v15  ;;  %1582 = vmatpush1.bf16.msra.mxu0 %v3798_v5  ;;  %v3813_v15 = vld [vmem:[#allocation2 + $0x488] ss:$16 sps:$4 sm:$0xff]  }
  0xaf   :  { %1627 = vmatpush1.bf16.msra.mxu1 %v3795_v4  ;;  %1583 = vmatprep.subr.bf16.mxu0 %v3806_v7  ;;  %v3873_v4 = vld [vmem:[#allocation2 + $0x528] ss:$16 sps:$4 sm:$0xff]   ;;  %v3893_v7 = vld [vmem:[%s4706_s3 + $0x64] ss:$12 sps:$4 sm:$0xff]  }
  0xb0   :  { %1628 = vmatprep.subr.bf16.mxu1 %v3803_v6  ;;  %1562 = vmatprep.mubr.bf16.mxu1 %v4195_v21  ;;  %v3822_v21 = vld [vmem:[#allocation2 + $0x3e8] ss:$16 sps:$4 sm:$0xff]   ;;  %v3878_v6 = vld [vmem:[#allocation2 + $0x50c] ss:$16 sps:$4 sm:$0xff]  }
  0xb1   :  { %v3890_v5 = vld [vmem:[%s4706_s3 + $0x7c] ss:$12 sps:$4 sm:$0xff]  }
  0xb2   :  { %1584 = vmatpush1.bf16.msra.mxu0 %v3804_v9  ;;  %v3891_v9 = vld [vmem:[%s4706_s3 + $0x60] ss:$12 sps:$4 sm:$0xff]  }
  0xb3   :  { %1629 = vmatpush1.bf16.msra.mxu1 %v3801_v8  ;;  %1585 = vmatprep.subr.bf16.mxu0 %v3812_v10  ;;  %v3881_v8 = vld [vmem:[#allocation2 + $0x60c] ss:$16 sps:$4 sm:$0xff]  }
  0xb4   :  { %1630 = vmatprep.subr.bf16.mxu1 %v3809_v53  ;;  %v3879_v53 = vld [vmem:[#allocation2 + $0x608] ss:$16 sps:$4 sm:$0xff]  }
  0xb5   :  { %v3896_v10 = vld [vmem:[%s4706_s3 + $0x4c] ss:$12 sps:$4 sm:$0xff]  }
  0xb6   :  { %1563 = vmatmul.mubr.bf16.gmra.mxu1 %v4215_v30  ;;  %1586 = vmatpush1.bf16.msra.mxu0 %v3810_v12  ;;  %v3828_v30 = vld [vmem:[#allocation2 + $0x3c8] ss:$16 sps:$4 sm:$0xff]   ;;  %v3897_v12 = vld [vmem:[%s4706_s3 + $0x30] ss:$12 sps:$4 sm:$0xff]  }
  0xb7   :  { %1631 = vmatpush1.bf16.msra.mxu1 %v3807_v11  ;;  %1587 = vmatprep.subr.bf16.mxu0 %v3818_v13  ;;  %v3899_v11 = vld [vmem:[%s4706_s3 + $0x34] ss:$12 sps:$4 sm:$0xff]   ;;  %v3900_v13 = vld [vmem:[%s4706_s3 + $0x18] ss:$12 sps:$4 sm:$0xff]  }
  0xb8   :  { %1632 = vmatprep.subr.bf16.mxu1 %v3815_v54  ;;  %1658 = vmatprep.mubr.bf16.mxu1 %v4239_v52  ;;  %v3842_v52 = vld [vmem:[#allocation2 + $0x38c] ss:$16 sps:$4 sm:$0xff]  }
  0xb9   :  { %v3902_v54 = vld [vmem:[%s4706_s3 + $0x1c] ss:$12 sps:$4 sm:$0xff]  }
  0xba   :  { %1588 = vmatpush1.bf16.msra.mxu0 %v3816_v14  ;;  %v3906_v14 = vld [vmem:[%s4706_s3 + $0x168] ss:$12 sps:$4 sm:$0xff]  }
  0xbb   :  { %1633 = vmatpush1.bf16.msra.mxu1 %v3813_v15  ;;  %1589 = vmatprep.subr.bf16.mxu0 %v3824_v18  ;;  %v3908_v15 = vld [vmem:[%s4706_s3 + $0x16c] ss:$12 sps:$4 sm:$0xff]   ;;  %v3914_v18 = vld [vmem:[%s4706_s3 + $0x13c] ss:$12 sps:$4 sm:$0xff]  }
  0xbc   :  { %1634 = vmatprep.subr.bf16.mxu1 %v3821_v17  ;;  %v3909_v17 = vld [vmem:[%s4706_s3 + $0x150] ss:$12 sps:$4 sm:$0xff]  }
  0xbe   :  { %1590 = vmatpush2.bf16.msra.mxu0 %v3822_v21  ;;  %v3945_v21 = vld [vmem:[%s4706_s3 + $0x228] ss:$12 sps:$4 sm:$0xff]  }
  0xbf   :  { %1635 = vmatpush1.bf16.msra.mxu1 %v3819_v19  ;;  %1591 = vmatprep.subr.bf16.mxu0 %v3830_v22  ;;  %v3912_v19 = vld [vmem:[%s4706_s3 + $0x138] ss:$12 sps:$4 sm:$0xff]  }
  0xc0   :  { %1636 = vmatprep.subr.bf16.mxu1 %v3827_v20  ;;  %v3947_v20 = vld [vmem:[%s4706_s3 + $0x22c] ss:$12 sps:$4 sm:$0xff]  }
  0xc1   :  { %v3920_v22 = vld [vmem:[%s4706_s3 + $0x10c] ss:$12 sps:$4 sm:$0xff]  }
  0xc2   :  { %1592 = vmatpush2.bf16.msra.mxu0 %v3828_v30  ;;  %v3951_v30 = vld [vmem:[%s4706_s3 + $0x214] ss:$12 sps:$4 sm:$0xff]  }
  0xc3   :  { %1637 = vmatpush1.bf16.msra.mxu1 %v3825_v24  ;;  %1593 = vmatprep.subr.bf16.mxu0 %v3836_v26  ;;  %v3923_v24 = vld [vmem:[%s4706_s3 + $0xf4] ss:$12 sps:$4 sm:$0xff]   ;;  %v3954_v26 = vld [vmem:[%s4706_s3 + $0x1fc] ss:$12 sps:$4 sm:$0xff]  }
  0xc4   :  { %1638 = vmatprep.subr.bf16.mxu1 %v3833_v25  ;;  %v3949_v25 = vld [vmem:[%s4706_s3 + $0x210] ss:$12 sps:$4 sm:$0xff]  }
  0xc6   :  { %1594 = vmatpush2.bf16.msra.mxu0 %v3834_v28  ;;  %v3952_v28 = vld [vmem:[%s4706_s3 + $0x1f8] ss:$12 sps:$4 sm:$0xff]  }
  0xc7   :  { %1639 = vmatpush1.bf16.msra.mxu1 %v3831_v27  ;;  %1595 = vmatprep.subr.bf16.mxu0 %v3842_v52  ;;  %v3921_v27 = vld [vmem:[%s4706_s3 + $0xf0] ss:$12 sps:$4 sm:$0xff]   ;;  %v3924_v52 = vld [vmem:[%s4706_s3 + $0xd8] ss:$12 sps:$4 sm:$0xff]  }
  0xc8   :  { %1640 = vmatprep.subr.bf16.mxu1 %v3839_v29  ;;  %v3926_v29 = vld [vmem:[%s4706_s3 + $0xdc] ss:$12 sps:$4 sm:$0xff]  }
  0xca   :  { %1596 = vmatpush2.bf16.msra.mxu0 %v3840_v33  ;;  %v3957_v33 = vld [vmem:[%s4706_s3 + $0x1e4] ss:$12 sps:$4 sm:$0xff]  }
  0xcb   :  { %1641 = vmatpush1.bf16.msra.mxu1 %v3837_v32  ;;  %1597 = vmatprep.subr.bf16.mxu0 %v3848_v36  ;;  %v3929_v32 = vld [vmem:[%s4706_s3 + $0xc4] ss:$12 sps:$4 sm:$0xff]   ;;  %v3960_v36 = vld [vmem:[%s4706_s3 + $0x1cc] ss:$12 sps:$4 sm:$0xff]  }
  0xcc   :  { %1642 = vmatprep.subr.bf16.mxu1 %v3845_v34  ;;  %v3955_v34 = vld [vmem:[%s4706_s3 + $0x1e0] ss:$12 sps:$4 sm:$0xff]  }
  0xce   :  { %1598 = vmatpush2.bf16.msra.mxu0 %v3846_v38  ;;  %v3958_v38 = vld [vmem:[%s4706_s3 + $0x1c8] ss:$12 sps:$4 sm:$0xff]  }
  0xcf   :  { %1643 = vmatpush2.bf16.msra.mxu1 %v3843_v37  ;;  %1599 = vmatprep.subr.bf16.mxu0 %v3854_v41  ;;  %v3927_v37 = vld [vmem:[%s4706_s3 + $0xc0] ss:$12 sps:$4 sm:$0xff]  }
  0xd0   :  { %1644 = vmatprep.subr.bf16.mxu1 %v3851_v40  ;;  %v3930_v40 = vld [vmem:[%s4706_s3 + $0x170] ss:$12 sps:$4 sm:$0xff]   ;;  %v3963_v41 = vld [vmem:[%s4706_s3 + $0x1b4] ss:$12 sps:$4 sm:$0xff]  }
  0xd2   :  { %1600 = vmatpush2.bf16.msra.mxu0 %v3852_v44  ;;  %v3966_v44 = vld [vmem:[%s4706_s3 + $0x19c] ss:$12 sps:$4 sm:$0xff]  }
  0xd3   :  { %1645 = vmatpush2.bf16.msra.mxu1 %v3849_v42  ;;  %1601 = vmatprep.subr.bf16.mxu0 %v3860_v46  ;;  %v3961_v42 = vld [vmem:[%s4706_s3 + $0x1b0] ss:$12 sps:$4 sm:$0xff]  }
  0xd4   :  { %1646 = vmatprep.subr.bf16.mxu1 %v3857_v45  ;;  %v3964_v45 = vld [vmem:[%s4706_s3 + $0x198] ss:$12 sps:$4 sm:$0xff]  }
  0xd5   :  { %v3969_v46 = vld [vmem:[%s4706_s3 + $0x184] ss:$12 sps:$4 sm:$0xff]  }
  0xd6   :  { %1602 = vmatpush2.bf16.msra.mxu0 %v3858_v48  ;;  %v3972_v48 = vld [vmem:[%s4706_s3 + $0x2ec] ss:$12 sps:$4 sm:$0xff]  }
  0xd7   :  { %1647 = vmatpush2.bf16.msra.mxu1 %v3855_v47  ;;  %1603 = vmatprep.subr.bf16.mxu0 %v3866_v51  ;;  %v3967_v47 = vld [vmem:[%s4706_s3 + $0x180] ss:$12 sps:$4 sm:$0xff]  }
  0xd8   :  { %1648 = vmatprep.subr.bf16.mxu1 %v3863_v49  ;;  %v3970_v49 = vld [vmem:[%s4706_s3 + $0x2e8] ss:$12 sps:$4 sm:$0xff]  }
  0xd9   :  { %v3975_v51 = vld [vmem:[%s4706_s3 + $0x2d4] ss:$12 sps:$4 sm:$0xff]  }
  0xda   :  { %1604 = vmatpush2.bf16.msra.mxu0 %v3864_v56  ;;  %v3978_v56 = vld [vmem:[%s4706_s3 + $0x2bc] ss:$12 sps:$4 sm:$0xff]  }
  0xdb   :  { %1649 = vmatpush2.bf16.msra.mxu1 %v3861_v55  ;;  %2413 = vmatprep.subr.bf16.mxu0 %v3884_v58  ;;  %v3973_v55 = vld [vmem:[%s4706_s3 + $0x2d0] ss:$12 sps:$4 sm:$0xff]  }
  0xdc   :  { %1650 = vmatprep.subr.bf16.mxu1 %v3869_v57  ;;  %v3976_v57 = vld [vmem:[%s4706_s3 + $0x2b8] ss:$12 sps:$4 sm:$0xff]  }
  0xdd   :  { %1606 = vmatmul.mubr.bf16.vlgmr.msra.gmra.mxu0 %v4190_v16  ;;  %v3888_v16 = vld [vmem:[%s4706_s3 + $0x78] ss:$12 sps:$4 sm:$0xff]  }
  0xde   :  { %1615 = vmatprep.mubr.bf16.mxu0 %v4197_v23  ;;  %2414 = vmatpush1.bf16.msra.mxu0 %v3882_v63  ;;  %v3876_v23 = vld [vmem:[#allocation2 + $0x508] ss:$16 sps:$4 sm:$0xff]  }
  0xdf   :  { %1651 = vmatpush2.bf16.msra.mxu1 %v3867_v60  ;;  %2415 = vmatprep.subr.bf16.mxu0 %v3887_v0  ;;  %v3981_v60 = vld [vmem:[%s4706_s3 + $0x2a4] ss:$12 sps:$4 sm:$0xff]   ;;  %v3984_v0 = vld [vmem:[%s4706_s3 + $0x28c] ss:$12 sps:$4 sm:$0xff]  }
  0xe0   :  { %1652 = vmatprep.subr.bf16.mxu1 %v3872_v61  ;;  %v3979_v61 = vld [vmem:[%s4706_s3 + $0x2a0] ss:$12 sps:$4 sm:$0xff]  }
  0xe2   :  { %2416 = vmatpush1.bf16.msra.mxu0 %v3885_v3  ;;  %v3987_v3 = vld [vmem:[%s4706_s3 + $0x274] ss:$12 sps:$4 sm:$0xff]  }
  0xe3   :  { %1653 = vmatpush2.bf16.msra.mxu1 %v3870_v1  ;;  %2417 = vmatprep.subr.bf16.mxu0 %v3890_v5  ;;  %v3982_v1 = vld [vmem:[%s4706_s3 + $0x288] ss:$12 sps:$4 sm:$0xff]  }
  0xe4   :  { %1654 = vmatprep.subr.bf16.mxu1 %v3875_v2 }
  0xe5   :  { %1616 = vmatmul.mubr.bf16.gmra.mxu0 %v4217_v31  ;;  %v3894_v31 = vld [vmem:[%s4706_s3 + $0x48] ss:$12 sps:$4 sm:$0xff]  }
  0xe6   :  { %2418 = vmatpush1.bf16.msra.mxu0 %v3888_v16  ;;  %v3990_v16 = vld [vmem:[%s4706_s3 + $0x25c] ss:$12 sps:$4 sm:$0xff]  }
  0xe7   :  { %1655 = vmatpush2.bf16.msra.mxu1 %v3873_v4  ;;  %2419 = vmatprep.subr.bf16.mxu0 %v3893_v7  ;;  %v3985_v4 = vld [vmem:[%s4706_s3 + $0x270] ss:$12 sps:$4 sm:$0xff]  }
  0xe8   :  { %1656 = vmatprep.subr.bf16.mxu1 %v3878_v6 }
  0xea   :  { %2420 = vmatpush1.bf16.msra.mxu0 %v3891_v9  ;;  %v3993_v9 = vld [vmem:[%s4706_s3 + $0x244] ss:$12 sps:$4 sm:$0xff]  }
  0xeb   :  { %1657 = vmatpush2.bf16.msra.mxu1 %v3876_v23  ;;  %2421 = vmatprep.subr.bf16.mxu0 %v3896_v10  ;;  %v3988_v23 = vld [vmem:[%s4706_s3 + $0x258] ss:$12 sps:$4 sm:$0xff]  }
  0xec   :  { %1693 = vmatprep.subr.bf16.mxu1 %v3881_v8 }
  0xee   :  { %1659 = vmatmul.mubr.bf16.vlgmr.msra.gmra.mxu1 %v4259_v43  ;;  %2422 = vmatpush1.bf16.msra.mxu0 %v3894_v31  ;;  %v3905_v43 = vld [vmem:[%s4706_s3 + $0x4] ss:$12 sps:$4 sm:$0xff]  }
  0xef   :  { %1694 = vmatpush1.bf16.msra.mxu1 %v3879_v53  ;;  %1668 = vmatprep.mubr.bf16.mxu1 %v4267_v50  ;;  %v3903_v50 = vld [vmem:[%s4706_s3] ss:$12 sps:$4 sm:$0xff]  }
  0xf0   :  { %2423 = vmatprep.subr.bf16.mxu0 %v3899_v11  ;;  %2466 = vmatprep.subr.bf16.mxu1 %v3947_v20  ;;  %v3991_v53 = vld [vmem:[%s4706_s3 + $0x240] ss:$12 sps:$4 sm:$0xff]   ;;  %v3994_v11 = vld [vmem:[%s4706_s3 + $0x2f0] ss:$12 sps:$4 sm:$0xff]  }
  0xf2   :  { %2424 = vmatpush1.bf16.msra.mxu0 %v3897_v12  ;;  %v301_v12 = vlaneseq }
  0xf3   :  { %2425 = vmatprep.subr.bf16.mxu0 %v3902_v54 }
  0xf6   :  { %1669 = vmatmul.mubr.bf16.gmra.mxu1 %v4277_v59  ;;  %2426 = vmatpush1.bf16.msra.mxu0 %v3900_v13  ;;  %v3911_v59 = vld [vmem:[%s4706_s3 + $0x154] ss:$12 sps:$4 sm:$0xff]  }
  0xf7   :  { %1711 = vmatprep.mubr.bf16.mxu1 %v4092_v35  ;;  %2427 = vmatprep.subr.bf16.mxu0 %v3905_v43  ;;  %v4495_v43 = vshrl.u32 %v301_v12, 7 }
  0xfa   :  { %2428 = vmatpush1.bf16.msra.mxu0 %v3903_v50 }
  0xfb   :  { %2429 = vmatprep.subr.bf16.mxu0 %v3908_v15 }
  0xfe   :  { %3286 = vmatmul.mubr.msk.bf16.vlgmr.msra.gmra.mxu1 %vm1301_vm0, %v4228_v39  ;;  %2430 = vmatpush2.bf16.msra.mxu0 %v3906_v14  ;;  %v3915_v39 = vld [vmem:[%s4706_s3 + $0x120] ss:$12 sps:$4 sm:$0xff]   ;;  %v307_v14 = vsub.s32 1, %v4495_v43 }
  0xff   :  { %1721 = vmatprep.mubr.bf16.mxu1 %v4092_v35  ;;  %2431 = vmatprep.subr.bf16.mxu0 %v3911_v59  ;;  %v3917_v35 = vld [vmem:[%s4706_s3 + $0x124] ss:$12 sps:$4 sm:$0xff]   ;;  %v303_v59 = vsub.s32 0, %v4495_v43 }
 0x100   :  { %2467 = vmatpush1.bf16.msra.mxu1 %v3945_v21 }
 0x101   :  { %2468 = vmatprep.subr.bf16.mxu1 %v3951_v30 }
 0x102   :  { %2432 = vmatpush2.bf16.msra.mxu0 %v3909_v17 }
 0x103   :  { %2433 = vmatprep.subr.bf16.mxu0 %v3914_v18 }
 0x104   :  { %2469 = vmatpush1.bf16.msra.mxu1 %v3949_v25 }
 0x105   :  { %2470 = vmatprep.subr.bf16.mxu1 %v3954_v26 }
 0x106   :  { %3287 = vmatmul.mubr.msk.bf16.gmra.mxu1 %vm1301_vm0, %v4248_v62  ;;  %2434 = vmatpush2.bf16.msra.mxu0 %v3912_v19  ;;  %v3918_v62 = vld [vmem:[%s4706_s3 + $0x108] ss:$12 sps:$4 sm:$0xff]   ;;  %v4502_v19 = vld [vmem:[%s4705_s2] sm:$0xf] }
 0x107   :  { %2435 = vmatprep.subr.bf16.mxu0 %v3917_v35  ;;  %v308_v35 = vrot.slane %v4502_v19, %v307_v14 }
 0x108   :  { %2471 = vmatpush1.bf16.msra.mxu1 %v3952_v28 }
 0x109   :  { %2472 = vmatprep.subr.bf16.mxu1 %v3957_v33 }
 0x10a   :  { %2436 = vmatpush2.bf16.msra.mxu0 %v3915_v39  ;;  %v304_v39 = vrot.slane %v4502_v19, %v303_v59 }
 0x10b   :  { %2437 = vmatprep.subr.bf16.mxu0 %v3920_v22 }
 0x10c   :  { %2473 = vmatpush1.bf16.msra.mxu1 %v3955_v34 }
 0x10d   :  { %2474 = vmatprep.subr.bf16.mxu1 %v3960_v36 }
 0x10e   :  { %2438 = vmatpush2.bf16.msra.mxu0 %v3918_v62 }
 0x10f   :  { %2439 = vmatprep.subr.bf16.mxu0 %v3923_v24 }
 0x110   :  { %2475 = vmatpush1.bf16.msra.mxu1 %v3958_v38 }
 0x111   :  { %2476 = vmatprep.subr.bf16.mxu1 %v3963_v41 }
 0x112   :  { %2440 = vmatpush2.bf16.msra.mxu0 %v3921_v27 }
 0x113   :  { %2441 = vmatprep.subr.bf16.mxu0 %v3926_v29 }
 0x114   :  { %2477 = vmatpush1.bf16.msra.mxu1 %v3961_v42 }
 0x115   :  { %2478 = vmatprep.subr.bf16.mxu1 %v3966_v44 }
 0x116   :  { %2442 = vmatpush2.bf16.msra.mxu0 %v3924_v52 }
 0x117   :  { %2443 = vmatprep.subr.bf16.mxu0 %v3929_v32 }
 0x118   :  { %2479 = vmatpush1.bf16.msra.mxu1 %v3964_v45 }
 0x119   :  { %2480 = vmatprep.subr.bf16.mxu1 %v3969_v46 }
 0x11a   :  { %2444 = vmatpush2.bf16.msra.mxu0 %v3927_v37 }
 0x11b   :  { %3437 = vmatprep.subr.bf16.mxu0 %v3930_v40 }
 0x11c   :  { %2481 = vmatpush1.bf16.msra.mxu1 %v3967_v47 }
 0x11d   :  { %2482 = vmatprep.subr.bf16.mxu1 %v3972_v48  ;;  %v1342_v5 = vpop.f32.mrf.mxu0 }
 0x11e   :  { %v1395_v58 = vpop.f32.mrf.mxu1  ;;  %v1343_v62 = vadd.f32 %v1342_v5, %v304_v39 }
 0x11f   :  { %v1344_v7 = vpop.f32.mrf.mxu0 }
 0x120   :  { %2483 = vmatpush2.bf16.msra.mxu1 %v3970_v49  ;;  %v1397_v63 = vpop.f32.mrf.mxu1  ;;  %v1345_v22 = vadd.f32 %v1344_v7, %v308_v35  ;;  %v1396_v29 = vadd.f32 %v1395_v58, %v1343_v62 }
 0x121   :  { %2484 = vmatprep.subr.bf16.mxu1 %v3975_v51  ;;  %v1346_v10 = vpop.f32.mrf.mxu0 }
 0x122   :  { %v1399_v2 = vpop.f32.mrf.mxu1  ;;  %v1347_v25 = vadd.f32 %v1346_v10, %v304_v39  ;;  %v1398_v27 = vadd.f32 %v1397_v63, %v1345_v22  ;;  %v3931_v10 = vld [vmem:[%s4706_s3 + $0xb0] ss:$12 sps:$4 sm:$0xff]  }
 0x123   :  { %v1348_v54 = vpop.f32.mrf.mxu0 }
 0x124   :  { %2485 = vmatpush2.bf16.msra.mxu1 %v3973_v55  ;;  %v1401_v6 = vpop.f32.mrf.mxu1  ;;  %v1349_v28 = vadd.f32 %v1348_v54, %v308_v35  ;;  %v1400_v33 = vadd.f32 %v1399_v2, %v1347_v25  ;;  %v3936_v25 = vld [vmem:[%s4706_s3 + $0x128] ss:$12 sps:$4 sm:$0xff]  }
 0x125   :  { %2486 = vmatprep.subr.bf16.mxu1 %v3978_v56  ;;  %v1352_v50 = vpop.f32.mrf.mxu0 }
 0x126   :  { %v1405_v8 = vpop.f32.mrf.mxu1  ;;  %v1402_v40 = vadd.f32 %v1401_v6, %v1349_v28  ;;  %v1353_v44 = vadd.f32 %v1352_v50, %v304_v39  ;;  %v3939_v28 = vld [vmem:[%s4706_s3 + $0x50] ss:$12 sps:$4 sm:$0xff]  }
 0x127   :  { %v1354_v17 = vpop.f32.mrf.mxu0 }
 0x128   :  { %2487 = vmatpush2.bf16.msra.mxu1 %v3976_v57  ;;  %v1407_v31 = vpop.f32.mrf.mxu1  ;;  %v1355_v41 = vadd.f32 %v1354_v17, %v308_v35 }
 0x129   :  { %2488 = vmatprep.subr.bf16.mxu1 %v3981_v60  ;;  %v1356_v21 = vpop.f32.mrf.mxu0 }
 0x12a   :  { %v1409_v13 = vpop.f32.mrf.mxu1  ;;  %v1357_v46 = vadd.f32 %v1356_v21, %v304_v39  ;;  %v1408_v57 = vadd.f32 %v1407_v31, %v1355_v41  ;;  %v3934_v39 = vld [vmem:[%s4706_s3 + $0x140] ss:$12 sps:$4 sm:$0xff]  }
 0x12b   :  { %v1358_v24 = vpop.f32.mrf.mxu0 }
 0x12c   :  { %2489 = vmatpush2.bf16.msra.mxu1 %v3979_v61  ;;  %v1411_v15 = vpop.f32.mrf.mxu1  ;;  %v1359_v58 = vadd.f32 %v1358_v24, %v308_v35  ;;  %v1406_v61 = vadd.f32 %v1405_v8, %v1353_v44  ;;  %v3932_v8 = vld [vmem:[%s4706_s3 + $0x158] ss:$12 sps:$4 sm:$0xff]   ;;  %v3935_v24 = vld [vmem:[%s4706_s3 + $0x80] ss:$12 sps:$4 sm:$0xff]  }
 0x12d   :  { %2490 = vmatprep.subr.bf16.mxu1 %v3984_v0 }
 0x12e   :  { %v1501_v18 = vpop.f32.mrf.mxu1  ;;  %v1412_v7 = vadd.f32 %v1411_v15, %v1359_v58  ;;  %v315_v58 = vsub.s32 3, %v4495_v43 }
 0x130   :  { %2491 = vmatpush2.bf16.msra.mxu1 %v3982_v1  ;;  %v1503_v20 = vpop.f32.mrf.mxu1  ;;  %v1410_v1 = vadd.f32 %v1409_v13, %v1357_v46 }
 0x131   :  { %2492 = vmatprep.subr.bf16.mxu1 %v3987_v3 }
 0x132   :  { %v1505_v30 = vpop.f32.mrf.mxu1 }
 0x134   :  { %2493 = vmatpush2.bf16.msra.mxu1 %v3985_v4  ;;  %v1507_v52 = vpop.f32.mrf.mxu1 }
 0x135   :  { %2494 = vmatprep.subr.bf16.mxu1 %v3990_v16 }
 0x136   :  { %v1511_v37 = vpop.f32.mrf.mxu1 }
 0x138   :  { %2495 = vmatpush2.bf16.msra.mxu1 %v3988_v23  ;;  %v1513_v55 = vpop.f32.mrf.mxu1 }
 0x139   :  { %2496 = vmatprep.subr.bf16.mxu1 %v3993_v9 }
 0x13a   :  { %v1515_v6 = vpop.f32.mrf.mxu1 }
 0x13c   :  { %2497 = vmatpush2.bf16.msra.mxu1 %v3991_v53  ;;  %v1517_v17 = vpop.f32.mrf.mxu1 }
 0x13d   :  { %3465 = vmatprep.subr.bf16.mxu1 %v3994_v11 }
 0x15d   :  { %v1448_v26 = vpop.f32.mrf.mxu0 }
 0x15e   :  { %v1449_v36 = vadd.f32 %v1448_v26, %v1396_v29  ;;  %v3937_v26 = vld [vmem:[%s4706_s3 + $0x68] ss:$12 sps:$4 sm:$0xff]   ;;  %v3940_v29 = vld [vmem:[%s4706_s3 + $0xf8] ss:$12 sps:$4 sm:$0xff]  }
 0x15f   :  { %v1450_v32 = vpop.f32.mrf.mxu0 }
 0x160   :  { %v1451_v34 = vadd.f32 %v1450_v32, %v1398_v27  ;;  %v1502_v51 = vadd.f32 %v1501_v18, %v1449_v36  ;;  %v3933_v18 = vld [vmem:[%s4706_s3 + $0x98] ss:$12 sps:$4 sm:$0xff]   ;;  %v3938_v27 = vld [vmem:[%s4706_s3 + $0x110] ss:$12 sps:$4 sm:$0xff]   ;;  %v3942_v32 = vld [vmem:[%s4706_s3 + $0xe0] ss:$12 sps:$4 sm:$0xff]  }
 0x161   :  { %v1452_v38 = vpop.f32.mrf.mxu0  ;;  %v3948_v36 = vld [vmem:[%s4706_s3 + $0x8] ss:$12 sps:$4 sm:$0xff]  }
 0x162   :  { %v1453_v42 = vadd.f32 %v1452_v38, %v1400_v33  ;;  %v1504_v47 = vadd.f32 %v1503_v20, %v1451_v34  ;;  %v1732_v5 = vmax.f32 %v1502_v51, 0.0  ;;  %v3943_v33 = vld [vmem:[%s4706_s3 + $0x20] ss:$12 sps:$4 sm:$0xff]   ;;  %v3944_v34 = vld [vmem:[%s4706_s3 + $0xc8] ss:$12 sps:$4 sm:$0xff]  }
 0x163   :  { %v1454_v45 = vpop.f32.mrf.mxu0 }
 0x164   :  { %v1506_v48 = vadd.f32 %v1505_v30, %v1453_v42  ;;  %v1455_v49 = vadd.f32 %v1454_v45, %v1402_v40  ;;  %v1733_v2 = vmax.f32 %v1504_v47, 0.0 }
 0x165   :  { %v1458_v56 = vpop.f32.mrf.mxu0 }
 0x166   :  { %v1508_v60 = vadd.f32 %v1507_v52, %v1455_v49  ;;  %v1736_v63 = vmax.f32 %v1506_v48, 0.0  ;;  %v1459_v16 = vadd.f32 %v1458_v56, %v1406_v61  ;;  %v3941_v52 = vld [vmem:[%s4706_s3 + $0x38] ss:$12 sps:$4 sm:$0xff]  }
 0x167   :  { %v1460_v0 = vpop.f32.mrf.mxu0 }
 0x168   :  { %v1737_v3 = vmax.f32 %v1508_v60, 0.0  ;;  %v1461_v4 = vadd.f32 %v1460_v0, %v1408_v57  ;;  %v1748_v31 = vpack.c.bf16 %v1736_v63, %v1732_v5  ;;  %v1512_v50 = vadd.f32 %v1511_v37, %v1459_v16 }
 0x169   :  { %v1462_v23 = vpop.f32.mrf.mxu0  ;;  %v311_v60 = vsub.s32 2, %v4495_v43 }
 0x16a   :  { %v1463_v9 = vadd.f32 %v1462_v23, %v1410_v1  ;;  %v1749_v53 = vpack.c.bf16 %v1737_v3, %v1733_v2  ;;  %v1514_v12 = vadd.f32 %v1513_v55, %v1461_v4  ;;  %v1740_v22 = vmax.f32 %v1512_v50, 0.0 }
 0x16b   :  { %v1464_v11 = vpop.f32.mrf.mxu0  ;;  %v316_v1 = vrot.slane %v4502_v19, %v315_v58  ;;  %v312_v2 = vrot.slane %v4502_v19, %v311_v60  ;;  %v3997_v58 = vld [vmem:[%s4706_s3 + $0x218] ss:$12 sps:$4 sm:$0xff]  }
 0x16c   :  { %v1516_v54 = vadd.f32 %v1515_v6, %v1463_v9  ;;  %v1465_v13 = vadd.f32 %v1464_v11, %v1412_v7  ;;  %2445 = vmatprep.mubr.bf16.mxu0 %v1749_v53  ;;  %v1741_v21 = vmax.f32 %v1514_v12, 0.0 }
 0x16d   :  { %2446 = vmatmul.mubr.bf16.vlgmr.msra.gmra.mxu0 %v1748_v31 }
 0x16e   :  { %v1518_v15 = vadd.f32 %v1517_v17, %v1465_v13  ;;  %3438 = vmatpush3.bf16.msra.mxu0 %v3931_v10  ;;  %v1744_v35 = vmax.f32 %v1516_v54, 0.0  ;;  %v1554_v37 = vpop.f32.mrf.mxu1 }
 0x16f   :  { %3439 = vmatprep.subr.bf16.mxu0 %v3932_v8  ;;  %v1555_v23 = vadd.f32 %v1554_v37, %v312_v2 }
 0x170   :  { %v1745_v20 = vmax.f32 %v1518_v15, 0.0  ;;  %v1752_v30 = vpack.c.bf16 %v1744_v35, %v1740_v22  ;;  %v1556_v38 = vpop.f32.mrf.mxu1 }
 0x171   :  { %v1557_v6 = vadd.f32 %v1556_v38, %v316_v1 }
 0x172   :  { %3440 = vmatpush3.bf16.msra.mxu0 %v3933_v18  ;;  %v1753_v62 = vpack.c.bf16 %v1745_v20, %v1741_v21  ;;  %v1558_v40 = vpop.f32.mrf.mxu1 }
 0x173   :  { %3441 = vmatprep.subr.bf16.mxu0 %v3934_v39  ;;  %v1559_v16 = vadd.f32 %v1558_v40, %v312_v2 }
 0x174   :  { %2455 = vmatprep.mubr.bf16.mxu0 %v1753_v62  ;;  %v1560_v41 = vpop.f32.mrf.mxu1 }
 0x175   :  { %2456 = vmatmul.mubr.bf16.gmra.mxu0 %v1752_v30 }
 0x176   :  { %3442 = vmatpush3.bf16.msra.mxu0 %v3935_v24  ;;  %2551 = vmatprep.mubr.bf16.mxu0 %v1749_v53  ;;  %v1564_v42 = vpop.f32.mrf.mxu1  ;;  %v1561_v53 = vadd.f32 %v1560_v41, %v316_v1 }
 0x177   :  { %3443 = vmatprep.subr.bf16.mxu0 %v3936_v25  ;;  %v1565_v21 = vadd.f32 %v1564_v42, %v312_v2  ;;  %v3995_v42 = vld [vmem:[%s4706_s3 + $0x230] ss:$12 sps:$4 sm:$0xff]  }
 0x178   :  { %v1566_v44 = vpop.f32.mrf.mxu1 }
 0x179   :  { %v1567_v19 = vadd.f32 %v1566_v44, %v316_v1 }
 0x17a   :  { %3444 = vmatpush3.bf16.msra.mxu0 %v3937_v26  ;;  %v1568_v45 = vpop.f32.mrf.mxu1 }
 0x17b   :  { %3445 = vmatprep.subr.bf16.mxu0 %v3938_v27 }
 0x17c   :  { %v1570_v47 = vpop.f32.mrf.mxu1 }
 0x17e   :  { %3446 = vmatpush3.bf16.msra.mxu0 %v3939_v28 }
 0x17f   :  { %3447 = vmatprep.subr.bf16.mxu0 %v3940_v29 }
 0x182   :  { %3448 = vmatpush3.bf16.msra.mxu0 %v3941_v52 }
 0x183   :  { %3449 = vmatprep.subr.bf16.mxu0 %v3942_v32 }
 0x186   :  { %3450 = vmatpush3.bf16.msra.mxu0 %v3943_v33 }
 0x187   :  { %3451 = vmatprep.subr.bf16.mxu0 %v3944_v34 }
 0x18a   :  { %3452 = vmatpush3.bf16.msra.mxu0 %v3948_v36 }
 0x18d   :  { %2552 = vmatmul.mubr.bf16.vlgmr.msra.gmra.mxu0 %v1748_v31 }
 0x18e   :  { %2559 = vmatprep.mubr.bf16.mxu0 %v1753_v62  ;;  %v1569_v62 = vadd.f32 %v1568_v45, %v312_v2 }
 0x195   :  { %2560 = vmatmul.mubr.bf16.gmra.mxu0 %v1752_v30  ;;  %v1571_v30 = vadd.f32 %v1570_v47, %v316_v1  ;;  %v3996_v47 = vld [vmem:[%s4706_s3 + $0x2d8] ss:$12 sps:$4 sm:$0xff]  }
 0x19d   :  { %v1607_v46 = vpop.f32.mrf.mxu0 }
 0x19e   :  { %v1608_v11 = vadd.f32 %v1607_v46, %v1555_v23  ;;  %v4002_v23 = vld [vmem:[%s4706_s3 + $0x290] ss:$12 sps:$4 sm:$0xff]  }
 0x19f   :  { %v1609_v48 = vpop.f32.mrf.mxu0 }
 0x1a0   :  { %v1610_v10 = vadd.f32 %v1609_v48, %v1557_v6  ;;  %v4000_v6 = vld [vmem:[%s4706_s3 + $0x2a8] ss:$12 sps:$4 sm:$0xff]  }
 0x1a1   :  { %v1611_v55 = vpop.f32.mrf.mxu0 }
 0x1a2   :  { %v1612_v31 = vadd.f32 %v1611_v55, %v1559_v16  ;;  %v4001_v16 = vld [vmem:[%s4706_s3 + $0x1e8] ss:$12 sps:$4 sm:$0xff]  }
 0x1a3   :  { %v1613_v61 = vpop.f32.mrf.mxu0 }
 0x1a4   :  { %v1614_v12 = vadd.f32 %v1613_v61, %v1561_v53  ;;  %v4005_v53 = vld [vmem:[%s4706_s3 + $0x1b8] ss:$12 sps:$4 sm:$0xff]  }
 0x1a5   :  { %v1617_v3 = vpop.f32.mrf.mxu0 }
 0x1a6   :  { %v1618_v33 = vadd.f32 %v1617_v3, %v1565_v21  ;;  %v4020_v21 = vld [vmem:[%s4708_s5 + $0x50] sm:$0xff]  }
 0x1a7   :  { %v1619_v7 = vpop.f32.mrf.mxu0 }
 0x1a8   :  { %v1620_v28 = vadd.f32 %v1619_v7, %v1567_v19  ;;  %v4003_v7 = vld [vmem:[%s4706_s3 + $0x1d0] ss:$12 sps:$4 sm:$0xff]   ;;  %v4016_v19 = vld [vmem:[%s4708_s5 + $0x60] sm:$0xff]  }
 0x1a9   :  { %v1621_v50 = vpop.f32.mrf.mxu0 }
 0x1aa   :  { %v1622_v29 = vadd.f32 %v1621_v50, %v1569_v62  ;;  %v4014_v50 = vld [vmem:[%s4708_s5 + $0x68] sm:$0xff]  }
 0x1ab   :  { %v1623_v25 = vpop.f32.mrf.mxu0  ;;  %v4023_v62 = vld [vmem:[%s4708_s5 + $0x8] sm:$0xff]  }
 0x1ac   :  { %v1624_v37 = vadd.f32 %v1623_v25, %v1571_v30  ;;  %v4025_v30 = vld [vmem:[%s4708_s5] sm:$0xff]   ;;  %v4026_v25 = vld [vmem:[%s4708_s5 + $0xb8] sm:$0xff]  }
 0x1ae   :  { %v1660_v49 = vpop.f32.mrf.mxu1 }
 0x1af   :  { %v1661_v17 = vadd.f32 %v1660_v49, %v1608_v11  ;;  %v4011_v11 = vld [vmem:[%s4708_s5 + $0x38] sm:$0xff]  }
 0x1b0   :  { %v1662_v51 = vpop.f32.mrf.mxu1 }
 0x1b1   :  { %v1663_v54 = vadd.f32 %v1662_v51, %v1610_v10  ;;  %v4006_v10 = vld [vmem:[%s4706_s3 + $0x260] ss:$12 sps:$4 sm:$0xff]  }
 0x1b2   :  { %v1664_v56 = vpop.f32.mrf.mxu1 }
 0x1b3   :  { %v1665_v13 = vadd.f32 %v1664_v56, %v1612_v31  ;;  %v4010_v31 = vld [vmem:[%s4708_s5 + $0x78] sm:$0xff]  }
 0x1b4   :  { %v1666_v57 = vpop.f32.mrf.mxu1  ;;  %3493 = vmatprep.subr.bf16.mxu0 %v4010_v31 }
 0x1b5   :  { %v1667_v18 = vadd.f32 %v1666_v57, %v1614_v12  ;;  %v4007_v12 = vld [vmem:[%s4706_s3 + $0x1a0] ss:$12 sps:$4 sm:$0xff]   ;;  %3494 = vmatpush3.bf16.msra.mxu0 %v4011_v11 }
 0x1b6   :  { %v1670_v63 = vpop.f32.mrf.mxu1 }
 0x1b7   :  { %v1671_v44 = vadd.f32 %v1670_v63, %v1618_v33  ;;  %v3998_v63 = vld [vmem:[%s4706_s3 + $0x2c0] ss:$12 sps:$4 sm:$0xff]  }
 0x1b8   :  { %v1672_v0 = vpop.f32.mrf.mxu1  ;;  %v4033_v33 = vld [vmem:[%s4708_s5 + $0x80] sm:$0xff]  }
 0x1b9   :  { %v1673_v38 = vadd.f32 %v1672_v0, %v1620_v28  ;;  %v4029_v28 = vld [vmem:[%s4708_s5 + $0xa0] sm:$0xff]  }
 0x1ba   :  { %v1674_v4 = vpop.f32.mrf.mxu1 }
 0x1bb   :  { %v1675_v40 = vadd.f32 %v1674_v4, %v1622_v29  ;;  %v3999_v4 = vld [vmem:[%s4706_s3 + $0x200] ss:$12 sps:$4 sm:$0xff]   ;;  %v4030_v29 = vld [vmem:[%s4708_s5 + $0x98] sm:$0xff]  }
 0x1bc   :  { %v1676_v5 = vpop.f32.mrf.mxu1 }
 0x1bd   :  { %v1677_v48 = vadd.f32 %v1676_v5, %v1624_v37 }
 0x1be   :  { %v1713_v9 = vpop.f32.mrf.mxu1 }
 0x1bf   :  { %v1714_v20 = vadd.f32 %v1713_v9, %v1661_v17  ;;  %v4004_v9 = vld [vmem:[%s4706_s3 + $0x278] ss:$12 sps:$4 sm:$0xff]   ;;  %v4009_v17 = vld [vmem:[%s4706_s3 + $0x188] ss:$12 sps:$4 sm:$0xff]  }
 0x1c0   :  { %v1715_v8 = vpop.f32.mrf.mxu1 }
 0x1c1   :  { %v1716_v35 = vadd.f32 %v1715_v8, %v1663_v54  ;;  %v1734_v34 = vmax.f32 %v1714_v20, 0.0  ;;  %v4012_v8 = vld [vmem:[%s4708_s5 + $0x70] sm:$0xff]  }
 0x1c2   :  { %v1717_v15 = vpop.f32.mrf.mxu1  ;;  %v4008_v54 = vld [vmem:[%s4706_s3 + $0x248] ss:$12 sps:$4 sm:$0xff]   ;;  %3495 = vmatprep.subr.bf16.mxu0 %v4012_v8 }
 0x1c3   :  { %v1718_v39 = vadd.f32 %v1717_v15, %v1665_v13  ;;  %v1735_v52 = vmax.f32 %v1716_v35, 0.0  ;;  %v4013_v13 = vld [vmem:[%s4708_s5 + $0x30] sm:$0xff]   ;;  %v4015_v15 = vld [vmem:[%s4708_s5 + $0x28] sm:$0xff]   ;;  %v4018_v35 = vld [vmem:[%s4708_s5 + $0x58] sm:$0xff]  }
 0x1c4   :  { %v1719_v22 = vpop.f32.mrf.mxu1  ;;  %3496 = vmatpush3.bf16.msra.mxu0 %v4013_v13  ;;  %v4021_v20 = vld [vmem:[%s4708_s5 + $0x10] sm:$0xff]  }
 0x1c5   :  { %v1720_v24 = vadd.f32 %v1719_v22, %v1667_v18  ;;  %v1738_v26 = vmax.f32 %v1718_v39, 0.0  ;;  %3497 = vmatprep.subr.bf16.mxu0 %v4014_v50  ;;  %v4017_v18 = vld [vmem:[%s4708_s5 + $0x20] sm:$0xff]   ;;  %v4019_v39 = vld [vmem:[%s4708_s5 + $0x18] sm:$0xff]   ;;  %v4022_v22 = vld [vmem:[%s4708_s5 + $0x48] sm:$0xff]  }
 0x1c6   :  { %v1723_v27 = vpop.f32.mrf.mxu1 }
 0x1c7   :  { %v1739_v32 = vmax.f32 %v1720_v24, 0.0  ;;  %v4564_v45 = vpack.c.bf16 %v1738_v26, %v1734_v34  ;;  %v1724_v55 = vadd.f32 %v1723_v27, %v1671_v44  ;;  %v4024_v24 = vld [vmem:[%s4708_s5 + $0x40] sm:$0xff]   ;;  %v4027_v26 = vld [vmem:[%s4708_s5 + $0xb0] sm:$0xff]   ;;  %v4028_v27 = vld [vmem:[%s4708_s5 + $0xa8] sm:$0xff]  }
 0x1c8   :  { %v1725_v36 = vpop.f32.mrf.mxu1  ;;  %3498 = vmatpush3.bf16.msra.mxu0 %v4015_v15 }
 0x1c9   :  { %v1751_v41 = vpack.c.bf16 %v1739_v32, %v1735_v52  ;;  %v1726_v49 = vadd.f32 %v1725_v36, %v1673_v38  ;;  %v1742_v2 = vmax.f32 %v1724_v55, 0.0  ;;  %3499 = vmatprep.subr.bf16.mxu0 %v4016_v19  ;;  %v4031_v52 = vld [vmem:[%s4708_s5 + $0x90] sm:$0xff]   ;;  %v4032_v32 = vld [vmem:[%s4708_s5 + $0x88] sm:$0xff]  }
 0x1ca   :  { %v1727_v46 = vpop.f32.mrf.mxu1 }
 0x1cb   :  { %v1728_v51 = vadd.f32 %v1727_v46, %v1675_v40  ;;  %2498 = vmatprep.mubr.bf16.mxu1 %v1751_v41  ;;  %v1743_v0 = vmax.f32 %v1726_v49, 0.0  ;;  %v1884_v40 = vld [vmem:[%s4707_s4] sm:$0x7] }
 0x1cc   :  { %v1729_v56 = vpop.f32.mrf.mxu1  ;;  %2499 = vmatmul.mubr.bf16.vlgmr.msra.gmra.mxu1 %v4564_v45  ;;  %3500 = vmatpush3.bf16.msra.mxu0 %v4017_v18  ;;  %v1889_v44 = vrot.slane %v1884_v40, %v303_v59 }
 0x1cd   :  { %v1730_v57 = vadd.f32 %v1729_v56, %v1677_v48  ;;  %3466 = vmatpush3.bf16.msra.mxu1 %v3995_v42  ;;  %v1746_v61 = vmax.f32 %v1728_v51, 0.0  ;;  %3501 = vmatprep.subr.bf16.mxu0 %v4018_v35  ;;  %v1893_v42 = vrot.slane %v1884_v40, %v307_v14 }
 0x1ce   :  { %3467 = vmatprep.subr.bf16.mxu1 %v3996_v47 }
 0x1cf   :  { %v1747_v1 = vmax.f32 %v1730_v57, 0.0  ;;  %v1754_v5 = vpack.c.bf16 %v1746_v61, %v1742_v2 }
 0x1d0   :  { %3502 = vmatpush3.bf16.msra.mxu0 %v4019_v39 }
 0x1d1   :  { %v1755_v3 = vpack.c.bf16 %v1747_v1, %v1743_v0  ;;  %3468 = vmatpush3.bf16.msra.mxu1 %v3997_v58  ;;  %3503 = vmatprep.subr.bf16.mxu0 %v4020_v21 }
 0x1d2   :  { %3469 = vmatprep.subr.bf16.mxu1 %v3998_v63 }
 0x1d3   :  { %2508 = vmatprep.mubr.bf16.mxu1 %v1755_v3 }
 0x1d4   :  { %2509 = vmatmul.mubr.bf16.gmra.mxu1 %v1754_v5  ;;  %3504 = vmatpush3.bf16.msra.mxu0 %v4021_v20 }
 0x1d5   :  { %3470 = vmatpush3.bf16.msra.mxu1 %v3999_v4  ;;  %2600 = vmatprep.mubr.bf16.mxu1 %v1751_v41 }
 0x1d6   :  { %3471 = vmatprep.subr.bf16.mxu1 %v4000_v6  ;;  %3505 = vmatprep.subr.bf16.mxu0 %v4022_v22 }
 0x1d8   :  { %3506 = vmatpush3.bf16.msra.mxu0 %v4023_v62 }
 0x1d9   :  { %3472 = vmatpush3.bf16.msra.mxu1 %v4001_v16  ;;  %3507 = vmatprep.subr.bf16.mxu0 %v4024_v24 }
 0x1da   :  { %3473 = vmatprep.subr.bf16.mxu1 %v4002_v23 }
 0x1dc   :  { %3508 = vmatpush3.bf16.msra.mxu0 %v4025_v30 }
 0x1dd   :  { %3474 = vmatpush3.bf16.msra.mxu1 %v4003_v7 }
 0x1de   :  { %3475 = vmatprep.subr.bf16.mxu1 %v4004_v9 }
 0x1e1   :  { %3476 = vmatpush3.bf16.msra.mxu1 %v4005_v53 }
 0x1e2   :  { %3477 = vmatprep.subr.bf16.mxu1 %v4006_v10 }
 0x1e5   :  { %3478 = vmatpush3.bf16.msra.mxu1 %v4007_v12 }
 0x1e6   :  { %3479 = vmatprep.subr.bf16.mxu1 %v4008_v54 }
 0x1e9   :  { %3480 = vmatpush3.bf16.msra.mxu1 %v4009_v17 }
 0x1ea   :  { %3541 = vmatprep.subr.bf16.mxu1 %v4026_v25 }
 0x1ec   :  { %2601 = vmatmul.mubr.bf16.vlgmr.msra.gmra.mxu1 %v4564_v45 }
 0x1ed   :  { %2608 = vmatprep.mubr.bf16.mxu1 %v1755_v3  ;;  %3542 = vmatpush3.bf16.msra.mxu1 %v4026_v25  ;;  %v1897_v25 = vrot.slane %v1884_v40, %v311_v60 }
 0x1ee   :  { %3543 = vmatprep.subr.bf16.mxu1 %v4027_v26 }
 0x1f1   :  { %3544 = vmatpush3.bf16.msra.mxu1 %v4027_v26 }
 0x1f2   :  { %3545 = vmatprep.subr.bf16.mxu1 %v4028_v27 }
 0x1f4   :  { %2609 = vmatmul.mubr.bf16.gmra.mxu1 %v1754_v5 }
 0x1f5   :  { %3546 = vmatpush3.bf16.msra.mxu1 %v4028_v27 }
 0x1f6   :  { %3547 = vmatprep.subr.bf16.mxu1 %v4029_v28 }
 0x1f9   :  { %3548 = vmatpush3.bf16.msra.mxu1 %v4029_v28 }
 0x1fa   :  { %3549 = vmatprep.subr.bf16.mxu1 %v4030_v29 }
 0x1fd   :  { %3550 = vmatpush3.bf16.msra.mxu1 %v4030_v29 }
 0x1fe   :  { %3551 = vmatprep.subr.bf16.mxu1 %v4031_v52 }
 0x201   :  { %3552 = vmatpush3.bf16.msra.mxu1 %v4031_v52 }
 0x202   :  { %3553 = vmatprep.subr.bf16.mxu1 %v4032_v32 }
 0x205   :  { %3554 = vmatpush3.bf16.msra.mxu1 %v4032_v32 }
 0x206   :  { %3555 = vmatprep.subr.bf16.mxu1 %v4033_v33 }
 0x209   :  { %3556 = vmatpush3.bf16.msra.mxu1 %v4033_v33 }
 0x22d   :  { %v2447_v34 = vpop.f32.mrf.mxu0 }
 0x22e   :  { %v2448_v51 = vadd.f32 %v2447_v34, %v1889_v44 }
 0x22f   :  { %v2449_v36 = vpop.f32.mrf.mxu0 }
 0x230   :  { %v2450_v48 = vadd.f32 %v2449_v36, %v1893_v42 }
 0x231   :  { %v2451_v37 = vpop.f32.mrf.mxu0 }
 0x232   :  { %v2452_v49 = vadd.f32 %v2451_v37, %v1889_v44 }
 0x233   :  { %v2453_v38 = vpop.f32.mrf.mxu0 }
 0x234   :  { %v2454_v56 = vadd.f32 %v2453_v38, %v1893_v42 }
 0x235   :  { %v2457_v41 = vpop.f32.mrf.mxu0 }
 0x236   :  { %v2458_v9 = vadd.f32 %v2457_v41, %v1889_v44 }
 0x237   :  { %v2459_v46 = vpop.f32.mrf.mxu0 }
 0x238   :  { %v2460_v16 = vadd.f32 %v2459_v46, %v1893_v42 }
 0x239   :  { %v2461_v61 = vpop.f32.mrf.mxu0 }
 0x23a   :  { %v2462_v23 = vadd.f32 %v2461_v61, %v1889_v44 }
 0x23b   :  { %v2463_v5 = vpop.f32.mrf.mxu0 }
 0x23c   :  { %v2464_v11 = vadd.f32 %v2463_v5, %v1893_v42  ;;  %v4038_v5 = vld [vmem:[#allocation4 + $0x18] sm:$0xff]  }
 0x24d   :  { %v3453_v53 = vpop.f32.mrf.mxu0 }
 0x24f   :  { %v3454_v17 = vpop.f32.mrf.mxu0 }
 0x250   :  { %v3455_v26 = vadd.f32 %v3454_v17, %v3453_v53 }
 0x251   :  { %v3456_v21 = vpop.f32.mrf.mxu0 }
 0x252   :  { %v2554_v33 = vadd.f32 %v3455_v26, %v1897_v25 }
 0x253   :  { %v3457_v22 = vpop.f32.mrf.mxu0 }
 0x254   :  { %v3458_v28 = vadd.f32 %v3457_v22, %v3456_v21 }
 0x255   :  { %v3459_v62 = vpop.f32.mrf.mxu0 }
 0x256   :  { %v2557_v36 = vadd.f32 %v3458_v28, %v1897_v25 }
 0x257   :  { %v3460_v24 = vpop.f32.mrf.mxu0 }
 0x258   :  { %v3461_v44 = vadd.f32 %v3460_v24, %v3459_v62 }
 0x259   :  { %v3462_v52 = vpop.f32.mrf.mxu0 }
 0x25b   :  { %v3463_v41 = vpop.f32.mrf.mxu0 }
 0x28c   :  { %v2500_v45 = vpop.f32.mrf.mxu1 }
 0x28d   :  { %v2501_v63 = vadd.f32 %v2500_v45, %v2448_v51 }
 0x28e   :  { %v2502_v47 = vpop.f32.mrf.mxu1 }
 0x28f   :  { %v2503_v57 = vadd.f32 %v2502_v47, %v2450_v48  ;;  %v2617_v59 = vmax.f32 %v2501_v63, 0.0  ;;  %v3464_v47 = vadd.f32 %v3463_v41, %v3462_v52 }
 0x290   :  { %v2504_v55 = vpop.f32.mrf.mxu1 }
 0x291   :  { %v2505_v58 = vadd.f32 %v2504_v55, %v2452_v49  ;;  %v2618_v14 = vmax.f32 %v2503_v57, 0.0  ;;  %v2562_v49 = vadd.f32 %v3461_v44, %v1897_v25 }
 0x292   :  { %v2506_v0 = vpop.f32.mrf.mxu1 }
 0x293   :  { %v2507_v1 = vadd.f32 %v2506_v0, %v2454_v56  ;;  %v2620_v2 = vmax.f32 %v2505_v58, 0.0  ;;  %v2565_v56 = vadd.f32 %v3464_v47, %v1897_v25 }
 0x294   :  { %v2510_v3 = vpop.f32.mrf.mxu1 }
 0x295   :  { %v2621_v4 = vmax.f32 %v2507_v1, 0.0  ;;  %v2629_v10 = vpack.c.bf16 %v2620_v2, %v2617_v59  ;;  %v2511_v54 = vadd.f32 %v2510_v3, %v2458_v9  ;;  %v4034_v2 = vld [vmem:[#allocation4 + $0x38] sm:$0xff]   ;;  %v4035_v3 = vld [vmem:[#allocation4 + $0x30] sm:$0xff]  }
 0x296   :  { %v2512_v6 = vpop.f32.mrf.mxu1  ;;  %3561 = vmatprep.subr.bf16.mxu0 %v4034_v2  ;;  %v4039_v59 = vld [vmem:[#allocation4 + $0x10] sm:$0xff]  }
 0x297   :  { %v2630_v7 = vpack.c.bf16 %v2621_v4, %v2618_v14  ;;  %v2513_v8 = vadd.f32 %v2512_v6, %v2460_v16  ;;  %v2623_v35 = vmax.f32 %v2511_v54, 0.0  ;;  %v4036_v14 = vld [vmem:[#allocation4 + $0x28] sm:$0xff]   ;;  %v4037_v4 = vld [vmem:[#allocation4 + $0x20] sm:$0xff]  }
 0x298   :  { %v2514_v31 = vpop.f32.mrf.mxu1  ;;  %v4040_v6 = vld [vmem:[#allocation4 + $0x8] sm:$0xff]   ;;  %v4041_v16 = vld [vmem:[#allocation4] sm:$0xff]  }
 0x299   :  { %v2515_v12 = vadd.f32 %v2514_v31, %v2462_v23  ;;  %2866 = vmatprep.mubr.bf16.mxu0 %v2630_v7  ;;  %v2624_v19 = vmax.f32 %v2513_v8, 0.0 }
 0x29a   :  { %v2516_v13 = vpop.f32.mrf.mxu1  ;;  %2867 = vmatmul.mubr.bf16.vlgmr.msra.gmra.mxu0 %v2629_v10 }
 0x29b   :  { %v2517_v50 = vadd.f32 %v2516_v13, %v2464_v11  ;;  %v2626_v15 = vmax.f32 %v2515_v12, 0.0  ;;  %3562 = vmatpush3.bf16.msra.mxu0 %v4034_v2 }
 0x29c   :  { %3563 = vmatprep.subr.bf16.mxu0 %v4035_v3 }
 0x29d   :  { %v2627_v18 = vmax.f32 %v2517_v50, 0.0  ;;  %v2632_v20 = vpack.c.bf16 %v2626_v15, %v2623_v35  ;;  %v3384_v50 = vld [vmem:[%s4709_s6] ss:$0 sm:$0xff] }
 0x29f   :  { %v2633_v39 = vpack.c.bf16 %v2627_v18, %v2624_v19  ;;  %3564 = vmatpush3.bf16.msra.mxu0 %v4035_v3 }
 0x2a0   :  { %3565 = vmatprep.subr.bf16.mxu0 %v4036_v14 }
 0x2a1   :  { %2874 = vmatprep.mubr.bf16.mxu0 %v2633_v39 }
 0x2a2   :  { %2875 = vmatmul.mubr.bf16.gmra.mxu0 %v2632_v20 }
 0x2a3   :  { %3566 = vmatpush3.bf16.msra.mxu0 %v4036_v14 }
 0x2a4   :  { %3567 = vmatprep.subr.bf16.mxu0 %v4037_v4 }
 0x2a7   :  { %3568 = vmatpush3.bf16.msra.mxu0 %v4037_v4 }
 0x2a8   :  { %3569 = vmatprep.subr.bf16.mxu0 %v4038_v5 }
 0x2ab   :  { %3570 = vmatpush3.bf16.msra.mxu0 %v4038_v5 }
 0x2ac   :  { %v3481_v30 = vpop.f32.mrf.mxu1  ;;  %3571 = vmatprep.subr.bf16.mxu0 %v4039_v59 }
 0x2ae   :  { %v3482_v27 = vpop.f32.mrf.mxu1 }
 0x2af   :  { %v3483_v29 = vadd.f32 %v3482_v27, %v3481_v30  ;;  %3572 = vmatpush3.bf16.msra.mxu0 %v4039_v59 }
 0x2b0   :  { %v3484_v32 = vpop.f32.mrf.mxu1  ;;  %3573 = vmatprep.subr.bf16.mxu0 %v4040_v6 }
 0x2b1   :  { %v2603_v37 = vadd.f32 %v3483_v29, %v2554_v33 }
 0x2b2   :  { %v3485_v34 = vpop.f32.mrf.mxu1 }
 0x2b3   :  { %v3486_v38 = vadd.f32 %v3485_v34, %v3484_v32  ;;  %v2619_v48 = vmax.f32 %v2603_v37, 0.0  ;;  %3574 = vmatpush3.bf16.msra.mxu0 %v4040_v6  ;;  %v3409_v34 = vld [vmem:[%s4711_s8] ss:$0 sm:$0xff] }
 0x2b4   :  { %v3487_v42 = vpop.f32.mrf.mxu1  ;;  %3575 = vmatprep.subr.bf16.mxu0 %v4041_v16 }
 0x2b5   :  { %v2606_v45 = vadd.f32 %v3486_v38, %v2557_v36 }
 0x2b6   :  { %v3488_v46 = vpop.f32.mrf.mxu1 }
 0x2b7   :  { %v2622_v43 = vmax.f32 %v2606_v45, 0.0  ;;  %v3489_v60 = vadd.f32 %v3488_v46, %v3487_v42  ;;  %3576 = vmatpush3.bf16.msra.mxu0 %v4041_v16 }
 0x2b8   :  { %v3490_v40 = vpop.f32.mrf.mxu1 }
 0x2b9   :  { %v2631_v51 = vpack.c.bf16 %v2622_v43, %v2619_v48  ;;  %v2611_v57 = vadd.f32 %v3489_v60, %v2562_v49 }
 0x2ba   :  { %v3491_v55 = vpop.f32.mrf.mxu1 }
 0x2bb   :  { %v3492_v58 = vadd.f32 %v3491_v55, %v3490_v40  ;;  %3557 = vmatprep.mubr.bf16.mxu1 %v2631_v51  ;;  %v2625_v63 = vmax.f32 %v2611_v57, 0.0 }
 0x2bd   :  { %v2614_v61 = vadd.f32 %v3492_v58, %v2565_v56 }
 0x2bf   :  { %v2628_v0 = vmax.f32 %v2614_v61, 0.0 }
 0x2c1   :  { %v2634_v1 = vpack.c.bf16 %v2628_v0, %v2625_v63 }
 0x2c3   :  { %3558 = vmatmul.mubr.bf16.vlgmr.msra.gmra.mxu1 %v2634_v1 }
 0x35a   :  { %v3509_v23 = vpop.f32.mrf.mxu0 }
 0x35c   :  { %v3510_v7 = vpop.f32.mrf.mxu0 }
 0x35d   :  { %v3511_v12 = vadd.f32 %v3510_v7, %v3509_v23 }
 0x35e   :  { %v3512_v9 = vpop.f32.mrf.mxu0 }
 0x35f   :  { %v2869_v18 = vadd.f32 %v3511_v12, %v3384_v50 }
 0x360   :  { %v3513_v53 = vpop.f32.mrf.mxu0 }
 0x361   :  { %v3514_v15 = vadd.f32 %v3513_v53, %v3512_v9 }
 0x362   :  { %v3515_v10 = vpop.f32.mrf.mxu0 }
 0x363   :  { %v2872_v62 = vadd.f32 %v3514_v15, %v3384_v50 }
 0x364   :  { %v3516_v31 = vpop.f32.mrf.mxu0 }
 0x365   :  { %v3517_v13 = vadd.f32 %v3516_v31, %v3515_v10 }
 0x366   :  { %v3518_v11 = vpop.f32.mrf.mxu0 }
 0x367   :  { %v2877_v39 = vadd.f32 %v3517_v13, %v3384_v50 }
 0x368   :  { %v3519_v8 = vpop.f32.mrf.mxu0 }
 0x369   :  { %v3520_v54 = vadd.f32 %v3519_v8, %v3518_v11 }
 0x36b   :  { %v2880_v35 = vadd.f32 %v3520_v54, %v3384_v50 }
 0x383   :  { %v3559_v17 = vpop.f32.mrf.mxu1 }
 0x384   :  { %v2926_v24 = vadd.f32 %v3559_v17, %v2877_v39 }
 0x385   :  { %v2917_v19 = vpop.f32.mrf.mxu1 }
 0x386   :  { %v2918_v20 = vadd.f32 %v2917_v19, %v2869_v18  ;;  %v2934_v29 = vmax.f32 %v2926_v24, 0.0 }
 0x387   :  { %v3560_v21 = vpop.f32.mrf.mxu1 }
 0x388   :  { %v2929_v22 = vadd.f32 %v3560_v21, %v2880_v35  ;;  %v2932_v27 = vmax.f32 %v2918_v20, 0.0 }
 0x389   :  { %v2920_v30 = vpop.f32.mrf.mxu1 }
 0x38a   :  { %v2921_v25 = vadd.f32 %v2920_v30, %v2872_v62  ;;  %v2935_v26 = vmax.f32 %v2929_v22, 0.0 }
 0x38c   :  { %v2933_v28 = vmax.f32 %v2921_v25, 0.0  ;;  %v2937_v32 = vpack.c.bf16 %v2935_v26, %v2934_v29 }
 0x38e   :  { %v2936_v52 = vpack.c.bf16 %v2933_v28, %v2932_v27 }
 0x390   :  { %3577 = vmatprep.mubr.bf16.mxu0 %v2936_v52 }
 0x391   :  { %3578 = vmatmul.mubr.bf16.vlgmr.msra.gmra.mxu0 %v2937_v32 }
 0x451   :  { %v3579_v33 = vpop.f32.mrf.mxu0 }
 0x452   :  { %v3052_v37 = vadd.f32 %v3579_v33, %v3409_v34 }
 0x453   :  { %v3043_v36 = vpop.f32.mrf.mxu0 }
 0x454   :  { %v3044_v41 = vadd.f32 %v3409_v34, %v3043_v36  ;;  %v3060_v45 = vmax.f32 %v3052_v37, 0.0 }
 0x455   :  { %v3580_v38 = vpop.f32.mrf.mxu0 }
 0x456   :  { %v3055_v42 = vadd.f32 %v3580_v38, %v3409_v34  ;;  %v3058_v48 = vmax.f32 %v3044_v41, 0.0 }
 0x457   :  { %v3046_v44 = vpop.f32.mrf.mxu0 }
 0x458   :  { %v3061_v46 = vmax.f32 %v3055_v42, 0.0  ;;  %v3047_v47 = vadd.f32 %v3409_v34, %v3046_v44 }
 0x45a   :  { %v3434_v43 = vpack.c.bf16 %v3061_v46, %v3060_v45  ;;  %v3059_v60 = vmax.f32 %v3047_v47, 0.0 }
 0x45c   :  { %3436 = vst [vmem:[%s4712_s9 + $0x8] sm:$0xff] %v3434_v43   ;;  %v3429_v40 = vpack.c.bf16 %v3059_v60, %v3058_v48 }
 0x45e   :  { %3430 = vst [vmem:[%s4712_s9] sm:$0xff] %v3429_v40  }
 0x45f   :  { %3086 = vsyncpa [#allocation3], 1 }
 0x460   :  { %3087 = vsyncpa [#allocation5], 1 }

</bundles_post_ra>
